<compile_context>
chip_gen: v5e
topology: v5e:2x2
jax: 0.10.0
libtpu: 0.0.40
codegen_flags: <defaults>
</compile_context>

<pallas_src>
import math
import functools

import jax
import jax.numpy as jnp
from jax import lax
from jax.experimental import pallas as pl
from jax.experimental.pallas import tpu as pltpu


def _round_up(x, m):
    return (x + m - 1) // m * m


# torch gate order is (input, forget, cell, output); kernel wants (i, f, o, g) so
# one sigmoid covers a contiguous 3*Hp lane slice and tanh covers the last block.
_GATE_PERM = [0, 1, 3, 2]


def _prep_gate_cols(w_t, H, Hp):
    """(rows, 4H) -> (rows, 4Hp); gates permuted to (i,f,o,g), each gate padded to a
    128-aligned Hp lane block (slices inside the kernel are free vreg views)."""
    r = w_t.shape[0]
    w4 = w_t.reshape(r, 4, H)[:, _GATE_PERM, :]
    w4 = jnp.pad(w4, ((0, 0), (0, 0), (0, Hp - H)))
    return w4.reshape(r, 4 * Hp)


def make_lstm_kernel(L, Hp, Tt, T_total):
    """L layers, padded hidden Hp, Tt steps per chunk, T_total real steps."""
    mask_tail = (T_total % Tt) != 0  # static

    def kernel(*refs):
        # ---- unpack (inputs, outputs, scratch in pallas_call order) ----
        x_ref, h0_ref, c0_ref = refs[0:3]
        off = 3
        wxh0_ref, b0_ref, whh0_ref = refs[off:off + 3]; off += 3
        wrec = refs[off:off + (L - 1)]; off += (L - 1)   # fused [Wxh;Whh], (2Hp,4Hp)
        brec = refs[off:off + (L - 1)]; off += (L - 1)   # (1, 4Hp) f32
        wout_ref, bout_ref = refs[off:off + 2]; off += 2
        y_ref, hn_ref, cn_ref = refs[off:off + 3]; off += 3
        xg_s, hy_s, h_s, c_s = refs[off:off + 4]

        chunk = pl.program_id(1)            # time-chunk index (inner, sequential)
        nchunks = pl.num_programs(1)
        Bb = x_ref.shape[1]
        Ip = x_ref.shape[2]
        cdt = wxh0_ref.dtype                # matmul compute dtype (bf16 or f32)

        @pl.when(chunk == 0)
        def _():
            h_s[...] = h0_ref[...]
            c_s[...] = c0_ref[...]

        # ---- (1) batched non-recurrent input projection for layer 0 ----
        x2d = x_ref[...].astype(cdt).reshape(Tt * Bb, Ip)
        xg = jnp.dot(x2d, wxh0_ref[...],
                     preferred_element_type=jnp.float32) + b0_ref[...]
        xg_s[...] = xg.reshape(Tt, Bb, 4 * Hp).astype(xg_s.dtype)

        # ---- (2) sequential recurrence over the chunk ----
        # Ragged tail: the last chunk just runs fewer steps (state freezes exactly,
        # no per-step selects).  hy_s rows past nsteps hold stale values whose y
        # projections are sliced away by the wrapper.
        if mask_tail:
            nsteps = jnp.minimum(Tt, T_total - chunk * Tt)
        else:
            nsteps = Tt

        @pl.loop(0, nsteps)
        def _(s):
            inp = None
            for l in range(L):
                h_prev = h_s[l]                      # f32 state, VMEM-resident
                c_prev = c_s[l]
                if l == 0:
                    gates = xg_s[s].astype(jnp.float32) + jnp.dot(
                        h_prev.astype(cdt), whh0_ref[...],
                        preferred_element_type=jnp.float32)
                else:
                    # TODO(synk): inter-layer dropout only supported as identity (p=0).
                    xh = jnp.concatenate([inp, h_prev.astype(cdt)], axis=-1)  # (Bb,2Hp)
                    gates = (jnp.dot(xh, wrec[l - 1][...],
                                     preferred_element_type=jnp.float32)
                             + brec[l - 1][...])
                # gate lanes pre-permuted to (i, f, o, g): 1 sigmoid + 2 tanh pushes
                sg = jax.nn.sigmoid(gates[:, :3 * Hp])
                i_t = sg[:, :Hp]
                f_t = sg[:, Hp:2 * Hp]
                o_t = sg[:, 2 * Hp:3 * Hp]
                g_t = jnp.tanh(gates[:, 3 * Hp:])
                cy = c_prev * f_t + i_t * g_t
                hy = o_t * jnp.tanh(cy)
                h_s[l] = hy
                c_s[l] = cy
                inp = hy.astype(cdt)
            hy_s[s] = inp                            # final-layer h for this step

        # ---- (3) batched output projection over the whole chunk ----
        hflat = hy_s[...].reshape(Tt * Bb, Hp)
        y = jnp.dot(hflat, wout_ref[...],
                    preferred_element_type=jnp.float32) + bout_ref[...]
        y_ref[...] = y.reshape(Tt, Bb, Ip)

        # ---- (4) states written back once per batch block ----
        @pl.when(chunk == nchunks - 1)
        def _():
            hn_ref[...] = h_s[...]
            cn_ref[...] = c_s[...]

    return kernel


def lstm_ario_forward(x, params, h0=None, c0=None, softmax=False,
                      time_chunk=128, compute_dtype=jnp.bfloat16,
                      batch_block=None):
    """x: (B, T, input_size) f32. Returns (y, (h_n, c_n)) like the torch module.

    compute_dtype: matmul/weight dtype (bf16 default for MXU; f32 = exact parity).
    batch_block:   optional batch tile size -> 2nd grid axis is batch ("parallel"),
                   which feeds both TensorCores on v7x.
    """
    B, T, I = x.shape
    L = len(params["w_xh"])            # static (pytree structure)
    H = params["w_hh"][0].shape[1]     # static (array shape)

    cdt = jnp.dtype(compute_dtype)
    wbytes = cdt.itemsize
    brow = 16 if wbytes < 4 else 8     # bf16 sublane packing needs rows % 16 == 0

    Bp = _round_up(B, brow)
    Hp = _round_up(H, 128)
    Ip = _round_up(I, 128)
    if batch_block is None:
        Bb = Bp
    else:
        Bb = max(brow, _round_up(int(batch_block), brow))
        Bp = _round_up(Bp, Bb)
    nb = Bp // Bb

    # ---- VMEM budget: pick Tt and an explicit scoped-VMEM limit ----
    try:
        vmem_cap = int(pltpu.get_tpu_info().vmem_capacity_bytes)
    except Exception:
        vmem_cap = 64 * 1024 * 1024    # conservative (v7x per-core)
    budget = int(vmem_cap * 0.70)

    def vmem_est(tt):
        w = (Ip + Hp + (L - 1) * 2 * Hp) * 4 * Hp * wbytes + Hp * Ip * wbytes
        w += (L * 4 * Hp + Ip) * 4                    # biases (f32, tiny)
        xy = 2 * 2 * tt * Bb * Ip * 4                 # x & y blocks, double-buffered
        scr = tt * Bb * (4 * Hp + Hp) * wbytes        # xg_s + hy_s staging scratch
        st = 6 * L * Bb * Hp * 4                      # h0/c0 blocks + h_s/c_s + hn/cn
        return w + xy + scr + st

    Tt = max(1, min(int(time_chunk), T))
    while Tt > 8 and vmem_est(Tt) > budget:
        Tt = max(8, Tt // 2)
    nchunks = pl.cdiv(T, Tt)
    Tp = nchunks * Tt
    vmem_limit = int(min(int(0.9 * vmem_cap), max(48 << 20, int(vmem_est(Tt) * 1.5))))

    if h0 is None:
        h0 = jnp.zeros((L, B, H), jnp.float32)
        c0 = jnp.zeros((L, B, H), jnp.float32)

    # padded inputs / states (padded entries are exactly zero -> exact math)
    x_t = jnp.transpose(x, (1, 0, 2))                                    # (T, B, I)
    x_t = jnp.pad(x_t, ((0, Tp - T), (0, Bp - B), (0, Ip - I)))
    h0p = jnp.pad(h0, ((0, 0), (0, Bp - B), (0, Hp - H)))
    c0p = jnp.pad(c0, ((0, 0), (0, Bp - B), (0, Hp - H)))

    # weights: (in, 4H) layout, gates permuted to (i,f,o,g), 128-aligned, compute dtype
    wxh0 = jnp.pad(_prep_gate_cols(params["w_xh"][0].T, H, Hp),
                   ((0, Ip - I), (0, 0))).astype(cdt)                    # (Ip, 4Hp)
    whh0 = jnp.pad(_prep_gate_cols(params["w_hh"][0].T, H, Hp),
                   ((0, Hp - H), (0, 0))).astype(cdt)                    # (Hp, 4Hp)
    b0 = _prep_gate_cols((params["b_xh"][0] + params["b_hh"][0]).reshape(1, 4 * H),
                         H, Hp)                                          # (1, 4Hp) f32

    wrec, brec = [], []
    for l in range(1, L):
        wx = jnp.pad(_prep_gate_cols(params["w_xh"][l].T, H, Hp), ((0, Hp - H), (0, 0)))
        wh = jnp.pad(_prep_gate_cols(params["w_hh"][l].T, H, Hp), ((0, Hp - H), (0, 0)))
        wrec.append(jnp.concatenate([wx, wh], axis=0).astype(cdt))       # (2Hp, 4Hp)
        brec.append(_prep_gate_cols(
            (params["b_xh"][l] + params["b_hh"][l]).reshape(1, 4 * H), H, Hp))

    w_out = jnp.pad(params["w_out"].T, ((0, Hp - H), (0, Ip - I))).astype(cdt)
    b_out = jnp.pad(params["b_out"].reshape(1, I), ((0, 0), (0, Ip - I)))

    resident = pl.Buffered(1)   # grid-invariant blocks: single VMEM buffer

    in_specs = [
        pl.BlockSpec((Tt, Bb, Ip), lambda b, t: (t, b, 0)),              # x chunk
        pl.BlockSpec((L, Bb, Hp), lambda b, t: (0, b, 0)),               # h0
        pl.BlockSpec((L, Bb, Hp), lambda b, t: (0, b, 0)),               # c0
        pl.BlockSpec((Ip, 4 * Hp), lambda b, t: (0, 0), pipeline_mode=resident),
        pl.BlockSpec((1, 4 * Hp), lambda b, t: (0, 0), pipeline_mode=resident),
        pl.BlockSpec((Hp, 4 * Hp), lambda b, t: (0, 0), pipeline_mode=resident),
    ]
    for _ in range(L - 1):
        in_specs.append(pl.BlockSpec((2 * Hp, 4 * Hp), lambda b, t: (0, 0),
                                     pipeline_mode=resident))
    for _ in range(L - 1):
        in_specs.append(pl.BlockSpec((1, 4 * Hp), lambda b, t: (0, 0),
                                     pipeline_mode=resident))
    in_specs.append(pl.BlockSpec((Hp, Ip), lambda b, t: (0, 0), pipeline_mode=resident))
    in_specs.append(pl.BlockSpec((1, Ip), lambda b, t: (0, 0), pipeline_mode=resident))

    out_specs = [
        pl.BlockSpec((Tt, Bb, Ip), lambda b, t: (t, b, 0)),              # y chunk
        pl.BlockSpec((L, Bb, Hp), lambda b, t: (0, b, 0)),               # h_n
        pl.BlockSpec((L, Bb, Hp), lambda b, t: (0, b, 0)),               # c_n
    ]
    out_shape = [
        jax.ShapeDtypeStruct((Tp, Bp, Ip), jnp.float32),
        jax.ShapeDtypeStruct((L, Bp, Hp), jnp.float32),
        jax.ShapeDtypeStruct((L, Bp, Hp), jnp.float32),
    ]
    scratch_shapes = [
        pltpu.VMEM((Tt, Bb, 4 * Hp), cdt),          # precomputed layer-0 input gates
        pltpu.VMEM((Tt, Bb, Hp), cdt),              # final-layer h per step
        pltpu.VMEM((L, Bb, Hp), jnp.float32),       # persistent h state (f32)
        pltpu.VMEM((L, Bb, Hp), jnp.float32),       # persistent c state (f32)
    ]

    y_t, h_n, c_n = pl.pallas_call(
        make_lstm_kernel(L, Hp, Tt, T),
        out_shape=out_shape,
        grid_spec=pltpu.PrefetchScalarGridSpec(
            num_scalar_prefetch=0,
            grid=(nb, nchunks),
            in_specs=in_specs,
            out_specs=out_specs,
            scratch_shapes=scratch_shapes,
        ),
        compiler_params=pltpu.CompilerParams(
            # batch blocks are independent (v7x dual-TC); time is sequential
            dimension_semantics=("parallel", "arbitrary"),
            vmem_limit_bytes=vmem_limit,
        ),
    )(x_t, h0p, c0p, wxh0, b0, whh0, *wrec, *brec, w_out, b_out)

    y = jnp.transpose(y_t[:T, :B, :I], (1, 0, 2))   # back to (B, T, I)
    h_n = h_n[:, :B, :H]
    c_n = c_n[:, :B, :H]
    if softmax:
        y = jax.nn.softmax(y, axis=-1)
    return y, (h_n, c_n)


def init_params(key, input_size, hidden_size, num_layers):
    """Deterministic init mirroring LSTMCell.reset_parameters (uniform +/- 1/sqrt(H)).
    params contains ONLY arrays (jit-safe); L/H are derived from shapes."""
    std = 1.0 / math.sqrt(hidden_size)
    params = {"w_xh": [], "b_xh": [], "w_hh": [], "b_hh": []}
    for l in range(num_layers):
        in_sz = input_size if l == 0 else hidden_size
        key, k1, k2, k3, k4 = jax.random.split(key, 5)
        params["w_xh"].append(jax.random.uniform(k1, (4 * hidden_size, in_sz),
                                                 jnp.float32, -std, std))
        params["b_xh"].append(jax.random.uniform(k2, (4 * hidden_size,),
                                                 jnp.float32, -std, std))
        params["w_hh"].append(jax.random.uniform(k3, (4 * hidden_size, hidden_size),
                                                 jnp.float32, -std, std))
        params["b_hh"].append(jax.random.uniform(k4, (4 * hidden_size,),
                                                 jnp.float32, -std, std))
    key, k1, k2 = jax.random.split(key, 3)
    params["w_out"] = jax.random.uniform(k1, (input_size, hidden_size),
                                         jnp.float32, -std, std)
    params["b_out"] = jax.random.uniform(k2, (input_size,),
                                         jnp.float32, -std, std)
    return params


def ref_forward(x, params, softmax=False):
    """Pure-JAX reference mirroring the PyTorch module (dropout p=0)."""
    B, T, I = x.shape
    L = len(params["w_xh"])
    H = params["w_hh"][0].shape[1]
    h = [jnp.zeros((B, H), jnp.float32) for _ in range(L)]
    c = [jnp.zeros((B, H), jnp.float32) for _ in range(L)]
    outs = []
    for t in range(T):
        inp = x[:, t, :]
        for l in range(L):
            gates = (inp @ params["w_xh"][l].T + params["b_xh"][l]
                     + h[l] @ params["w_hh"][l].T + params["b_hh"][l])
            i_t = jax.nn.sigmoid(gates[:, :H])
            f_t = jax.nn.sigmoid(gates[:, H:2 * H])
            g_t = jnp.tanh(gates[:, 2 * H:3 * H])
            o_t = jax.nn.sigmoid(gates[:, 3 * H:])
            c[l] = c[l] * f_t + i_t * g_t
            h[l] = o_t * jnp.tanh(c[l])
            inp = h[l]
        outs.append(inp)
    y = jnp.stack(outs, 1) @ params["w_out"].T + params["b_out"]
    if softmax:
        y = jax.nn.softmax(y, axis=-1)
    return y, (jnp.stack(h), jnp.stack(c))


if __name__ == "__main__":
    B, T, I, H, L = 2, 8, 16, 32, 2  # dropout p=0 (identity)

    key = jax.random.PRNGKey(0)
    kx, kx2, kx3, kp = jax.random.split(key, 4)
    x = jax.random.normal(kx, (B, T, I), jnp.float32)
    params = init_params(kp, I, H, L)
    y_ref, (h_ref, c_ref) = ref_forward(x, params)

    # (1) f32 compute path: exact parity with the reference
    fwd32 = jax.jit(functools.partial(lstm_ario_forward, softmax=False,
                                      compute_dtype=jnp.float32))
    y, (h_n, c_n) = fwd32(x, params)
    jax.block_until_ready((y, h_n, c_n))
    assert y.shape == (B, T, I) and h_n.shape == (L, B, H) and c_n.shape == (L, B, H)
    assert jnp.allclose(y, y_ref, atol=1e-5, rtol=1e-5)
    assert jnp.allclose(h_n, h_ref, atol=1e-5, rtol=1e-5)
    assert jnp.allclose(c_n, c_ref, atol=1e-5, rtol=1e-5)

    # (2) default bf16 MXU path (looser tolerance: bf16 weights/activations)
    fwd_bf16 = jax.jit(functools.partial(lstm_ario_forward, softmax=False))
    yb, (hb, cb) = fwd_bf16(x, params)
    jax.block_until_ready((yb, hb, cb))
    assert jnp.allclose(yb, y_ref, atol=5e-2, rtol=5e-2)
    assert jnp.allclose(hb, h_ref, atol=5e-2, rtol=5e-2)
    assert jnp.allclose(cb, c_ref, atol=5e-2, rtol=5e-2)

    # (3) softmax=True path (matches self.out_acc), f32 exact
    y_sm, _ = jax.jit(functools.partial(lstm_ario_forward, softmax=True,
                                        compute_dtype=jnp.float32))(x, params)
    jax.block_until_ready(y_sm)
    assert jnp.allclose(y_sm, jax.nn.softmax(y_ref, axis=-1), atol=1e-5, rtol=1e-5)

    # (4) multi-chunk + ragged-tail path (T=10, chunk=4 -> 3 chunks, last runs 2 steps)
    x2 = jax.random.normal(kx2, (B, 10, I), jnp.float32)
    fwd2 = jax.jit(functools.partial(lstm_ario_forward, softmax=False,
                                     time_chunk=4, compute_dtype=jnp.float32))
    y2, (h2, c2) = fwd2(x2, params)
    jax.block_until_ready((y2, h2, c2))
    y2_ref, (h2_ref, c2_ref) = ref_forward(x2, params)
    assert jnp.allclose(y2, y2_ref, atol=1e-5, rtol=1e-5)
    assert jnp.allclose(h2, h2_ref, atol=1e-5, rtol=1e-5)
    assert jnp.allclose(c2, c2_ref, atol=1e-5, rtol=1e-5)

    # (5) batch-split grid (the v7x dual-TensorCore path), f32 exact
    x3 = jax.random.normal(kx3, (12, 6, I), jnp.float32)
    fwd3 = jax.jit(functools.partial(lstm_ario_forward, softmax=False,
                                     compute_dtype=jnp.float32, batch_block=8))
    y3, (h3, c3) = fwd3(x3, params)
    jax.block_until_ready((y3, h3, c3))
    y3_ref, (h3_ref, c3_ref) = ref_forward(x3, params)
    assert jnp.allclose(y3, y3_ref, atol=1e-5, rtol=1e-5)
    assert jnp.allclose(h3, h3_ref, atol=1e-5, rtol=1e-5)
    assert jnp.allclose(c3, c3_ref, atol=1e-5, rtol=1e-5)

    print("KERNEL_OK")
</pallas_src>

<mosaic_0001>
module attributes {stable_mosaic.version = 11 : i64} {
  func.func @kernel(%arg0: i32, %arg1: i32, %arg2: memref<8x8x128xf32, #tpu.memory_space<vmem>>, %arg3: memref<2x8x128xf32, #tpu.memory_space<vmem>>, %arg4: memref<2x8x128xf32, #tpu.memory_space<vmem>>, %arg5: memref<128x512xf32, #tpu.memory_space<vmem>>, %arg6: memref<1x512xf32, #tpu.memory_space<vmem>>, %arg7: memref<128x512xf32, #tpu.memory_space<vmem>>, %arg8: memref<256x512xf32, #tpu.memory_space<vmem>>, %arg9: memref<1x512xf32, #tpu.memory_space<vmem>>, %arg10: memref<128x128xf32, #tpu.memory_space<vmem>>, %arg11: memref<1x128xf32, #tpu.memory_space<vmem>>, %arg12: memref<8x8x128xf32, #tpu.memory_space<vmem>>, %arg13: memref<2x8x128xf32, #tpu.memory_space<vmem>>, %arg14: memref<2x8x128xf32, #tpu.memory_space<vmem>>, %arg15: memref<8x8x512xf32, #tpu.memory_space<vmem>>, %arg16: memref<8x8x128xf32, #tpu.memory_space<vmem>>, %arg17: memref<2x8x128xf32, #tpu.memory_space<vmem>>, %arg18: memref<2x8x128xf32, #tpu.memory_space<vmem>>) attributes {dimension_semantics = [#tpu.dimension_semantics<parallel>, #tpu.dimension_semantics<arbitrary>], iteration_bounds = array<i64: 1, 1>, scalar_prefetch = 0 : i64, scratch_operands = 4 : i64, tpu.core_type = #tpu.core_type<tc>, window_params = [{transform_indices = @transform_0, window_bounds = array<i64: 8, 8, 128>}, {transform_indices = @transform_1, window_bounds = array<i64: 2, 8, 128>}, {transform_indices = @transform_2, window_bounds = array<i64: 2, 8, 128>}, {pipeline_mode = #tpu.pipeline_mode<synchronous>, transform_indices = @transform_3, window_bounds = array<i64: 128, 512>}, {pipeline_mode = #tpu.pipeline_mode<synchronous>, transform_indices = @transform_4, window_bounds = array<i64: 1, 512>}, {pipeline_mode = #tpu.pipeline_mode<synchronous>, transform_indices = @transform_5, window_bounds = array<i64: 128, 512>}, {pipeline_mode = #tpu.pipeline_mode<synchronous>, transform_indices = @transform_6, window_bounds = array<i64: 256, 512>}, {pipeline_mode = #tpu.pipeline_mode<synchronous>, transform_indices = @transform_7, window_bounds = array<i64: 1, 512>}, {pipeline_mode = #tpu.pipeline_mode<synchronous>, transform_indices = @transform_8, window_bounds = array<i64: 128, 128>}, {pipeline_mode = #tpu.pipeline_mode<synchronous>, transform_indices = @transform_9, window_bounds = array<i64: 1, 128>}, {transform_indices = @transform_10, window_bounds = array<i64: 8, 8, 128>}, {transform_indices = @transform_11, window_bounds = array<i64: 2, 8, 128>}, {transform_indices = @transform_12, window_bounds = array<i64: 2, 8, 128>}]} {
    %c0_i32 = arith.constant 0 : i32
    %0 = arith.cmpi eq, %arg1, %c0_i32 : i32
    %1 = arith.extui %0 : i1 to i32
    %c0_i32_0 = arith.constant 0 : i32
    %2 = arith.cmpi ne, %1, %c0_i32_0 : i32
    scf.if %2 {
      %c0_25 = arith.constant 0 : index
      %c0_26 = arith.constant 0 : index
      %c0_27 = arith.constant 0 : index
      %25 = vector.load %arg3[%c0_25, %c0_26, %c0_27] : memref<2x8x128xf32, #tpu.memory_space<vmem>>, vector<2x8x128xf32>
      %c0_28 = arith.constant 0 : index
      %c0_29 = arith.constant 0 : index
      %c0_30 = arith.constant 0 : index
      %26 = vector.load %arg17[%c0_28, %c0_29, %c0_30] : memref<2x8x128xf32, #tpu.memory_space<vmem>>, vector<2x8x128xf32>
      tpu.vector_store %arg17[%c0_28, %c0_29, %c0_30], %25 {strides = array<i32>} : memref<2x8x128xf32, #tpu.memory_space<vmem>>, vector<2x8x128xf32>,
      %c0_31 = arith.constant 0 : index
      %c0_32 = arith.constant 0 : index
      %c0_33 = arith.constant 0 : index
      %27 = vector.load %arg4[%c0_31, %c0_32, %c0_33] : memref<2x8x128xf32, #tpu.memory_space<vmem>>, vector<2x8x128xf32>
      %c0_34 = arith.constant 0 : index
      %c0_35 = arith.constant 0 : index
      %c0_36 = arith.constant 0 : index
      %28 = vector.load %arg18[%c0_34, %c0_35, %c0_36] : memref<2x8x128xf32, #tpu.memory_space<vmem>>, vector<2x8x128xf32>
      tpu.vector_store %arg18[%c0_34, %c0_35, %c0_36], %27 {strides = array<i32>} : memref<2x8x128xf32, #tpu.memory_space<vmem>>, vector<2x8x128xf32>,
    } else {
    }
    %c0 = arith.constant 0 : index
    %c0_1 = arith.constant 0 : index
    %c0_2 = arith.constant 0 : index
    %3 = vector.load %arg2[%c0, %c0_1, %c0_2] : memref<8x8x128xf32, #tpu.memory_space<vmem>>, vector<8x8x128xf32>
    %4 = vector.shape_cast %3 : vector<8x8x128xf32> to vector<64x128xf32>
    %c0_3 = arith.constant 0 : index
    %c0_4 = arith.constant 0 : index
    %5 = vector.load %arg5[%c0_3, %c0_4] : memref<128x512xf32, #tpu.memory_space<vmem>>, vector<128x512xf32>
    %cst = arith.constant dense<0.000000e+00> : vector<64x512xf32>
    %6 = tpu.matmul %4, %5, %cst {dimension_numbers = #tpu.dot_dimension_numbers<[1], [0], [0], [1], [0, 0, 1, 1], [], []>} : vector<64x128xf32>, vector<128x512xf32>, vector<64x512xf32> -> vector<64x512xf32>
    %c0_5 = arith.constant 0 : index
    %c0_6 = arith.constant 0 : index
    %7 = vector.load %arg6[%c0_5, %c0_6] : memref<1x512xf32, #tpu.memory_space<vmem>>, vector<1x512xf32>
    %8 = vector.broadcast %7 : vector<1x512xf32> to vector<64x512xf32>
    %9 = arith.addf %6, %8 : vector<64x512xf32>
    %10 = vector.shape_cast %9 : vector<64x512xf32> to vector<8x8x512xf32>
    %c0_7 = arith.constant 0 : index
    %c0_8 = arith.constant 0 : index
    %c0_9 = arith.constant 0 : index
    %11 = vector.load %arg15[%c0_7, %c0_8, %c0_9] : memref<8x8x512xf32, #tpu.memory_space<vmem>>, vector<8x8x512xf32>
    tpu.vector_store %arg15[%c0_7, %c0_8, %c0_9], %10 {strides = array<i32>} : memref<8x8x512xf32, #tpu.memory_space<vmem>>, vector<8x8x512xf32>,
    %c0_i32_10 = arith.constant 0 : i32
    %c8_i32 = arith.constant 8 : i32
    %12 = arith.addi %c0_i32_10, %c8_i32 : i32
    %c1_i32 = arith.constant 1 : i32
    scf.for %arg19 = %c0_i32_10 to %12 step %c1_i32  : i32 {
      %c1_i32_25 = arith.constant 1 : i32
      %25 = arith.muli %arg19, %c1_i32_25 : i32
      %c0_i32_26 = arith.constant 0 : i32
      %26 = arith.addi %c0_i32_26, %25 : i32
      %c0_27 = arith.constant 0 : index
      %c0_28 = arith.constant 0 : index
      %c0_29 = arith.constant 0 : index
      %27 = vector.load %arg17[%c0_27, %c0_28, %c0_29] : memref<2x8x128xf32, #tpu.memory_space<vmem>>, vector<1x8x128xf32>
      %28 = vector.shape_cast %27 : vector<1x8x128xf32> to vector<8x128xf32>
      %c0_30 = arith.constant 0 : index
      %c0_31 = arith.constant 0 : index
      %c0_32 = arith.constant 0 : index
      %29 = vector.load %arg18[%c0_30, %c0_31, %c0_32] : memref<2x8x128xf32, #tpu.memory_space<vmem>>, vector<1x8x128xf32>
      %30 = vector.shape_cast %29 : vector<1x8x128xf32> to vector<8x128xf32>
      %31 = arith.index_cast %26 : i32 to index
      %c0_33 = arith.constant 0 : index
      %c0_34 = arith.constant 0 : index
      %32 = vector.load %arg15[%31, %c0_33, %c0_34] : memref<8x8x512xf32, #tpu.memory_space<vmem>>, vector<1x8x512xf32>
      %33 = vector.shape_cast %32 : vector<1x8x512xf32> to vector<8x512xf32>
      %c0_35 = arith.constant 0 : index
      %c0_36 = arith.constant 0 : index
      %34 = vector.load %arg7[%c0_35, %c0_36] : memref<128x512xf32, #tpu.memory_space<vmem>>, vector<128x512xf32>
      %cst_37 = arith.constant dense<0.000000e+00> : vector<8x512xf32>
      %35 = tpu.matmul %28, %34, %cst_37 {dimension_numbers = #tpu.dot_dimension_numbers<[1], [0], [0], [1], [0, 0, 1, 1], [], []>} : vector<8x128xf32>, vector<128x512xf32>, vector<8x512xf32> -> vector<8x512xf32>
      %36 = arith.addf %33, %35 : vector<8x512xf32>
      %37 = vector.extract_strided_slice %36 {offsets = [0, 0], sizes = [8, 384], strides = [1, 1]} : vector<8x512xf32> to vector<8x384xf32>
      %38 = arith.negf %37 : vector<8x384xf32>
      %39 = math.exp %38 : vector<8x384xf32>
      %cst_38 = arith.constant 1.000000e+00 : f32
      %40 = vector.broadcast %cst_38 : f32 to vector<8x384xf32>
      %41 = arith.addf %40, %39 : vector<8x384xf32>
      %42 = arith.divf %40, %41 : vector<8x384xf32>
      %43 = vector.extract_strided_slice %42 {offsets = [0, 0], sizes = [8, 128], strides = [1, 1]} : vector<8x384xf32> to vector<8x128xf32>
      %44 = vector.extract_strided_slice %42 {offsets = [0, 128], sizes = [8, 128], strides = [1, 1]} : vector<8x384xf32> to vector<8x128xf32>
      %45 = vector.extract_strided_slice %42 {offsets = [0, 256], sizes = [8, 128], strides = [1, 1]} : vector<8x384xf32> to vector<8x128xf32>
      %46 = vector.extract_strided_slice %36 {offsets = [0, 384], sizes = [8, 128], strides = [1, 1]} : vector<8x512xf32> to vector<8x128xf32>
      %47 = math.tanh %46 : vector<8x128xf32>
      %48 = arith.mulf %30, %44 : vector<8x128xf32>
      %49 = arith.mulf %43, %47 : vector<8x128xf32>
      %50 = arith.addf %48, %49 : vector<8x128xf32>
      %51 = math.tanh %50 : vector<8x128xf32>
      %52 = arith.mulf %45, %51 : vector<8x128xf32>
      %c0_39 = arith.constant 0 : index
      %c0_40 = arith.constant 0 : index
      %c0_41 = arith.constant 0 : index
      %53 = vector.load %arg17[%c0_39, %c0_40, %c0_41] : memref<2x8x128xf32, #tpu.memory_space<vmem>>, vector<1x8x128xf32>
      %54 = vector.shape_cast %53 : vector<1x8x128xf32> to vector<8x128xf32>
      %55 = vector.shape_cast %52 : vector<8x128xf32> to vector<1x8x128xf32>
      tpu.vector_store %arg17[%c0_39, %c0_40, %c0_41], %55 {strides = array<i32>} : memref<2x8x128xf32, #tpu.memory_space<vmem>>, vector<1x8x128xf32>,
      %c0_42 = arith.constant 0 : index
      %c0_43 = arith.constant 0 : index
      %c0_44 = arith.constant 0 : index
      %56 = vector.load %arg18[%c0_42, %c0_43, %c0_44] : memref<2x8x128xf32, #tpu.memory_space<vmem>>, vector<1x8x128xf32>
      %57 = vector.shape_cast %56 : vector<1x8x128xf32> to vector<8x128xf32>
      %58 = vector.shape_cast %50 : vector<8x128xf32> to vector<1x8x128xf32>
      tpu.vector_store %arg18[%c0_42, %c0_43, %c0_44], %58 {strides = array<i32>} : memref<2x8x128xf32, #tpu.memory_space<vmem>>, vector<1x8x128xf32>,
      %c1 = arith.constant 1 : index
      %c0_45 = arith.constant 0 : index
      %c0_46 = arith.constant 0 : index
      %59 = vector.load %arg17[%c1, %c0_45, %c0_46] : memref<2x8x128xf32, #tpu.memory_space<vmem>>, vector<1x8x128xf32>
      %60 = vector.shape_cast %59 : vector<1x8x128xf32> to vector<8x128xf32>
      %c1_47 = arith.constant 1 : index
      %c0_48 = arith.constant 0 : index
      %c0_49 = arith.constant 0 : index
      %61 = vector.load %arg18[%c1_47, %c0_48, %c0_49] : memref<2x8x128xf32, #tpu.memory_space<vmem>>, vector<1x8x128xf32>
      %62 = vector.shape_cast %61 : vector<1x8x128xf32> to vector<8x128xf32>
      %63 = tpu.concatenate %52, %60 in 1 : vector<8x128xf32>, vector<8x128xf32> -> vector<8x256xf32>
      %c0_50 = arith.constant 0 : index
      %c0_51 = arith.constant 0 : index
      %64 = vector.load %arg8[%c0_50, %c0_51] : memref<256x512xf32, #tpu.memory_space<vmem>>, vector<256x512xf32>
      %cst_52 = arith.constant dense<0.000000e+00> : vector<8x512xf32>
      %65 = tpu.matmul %63, %64, %cst_52 {dimension_numbers = #tpu.dot_dimension_numbers<[1], [0], [0], [1], [0, 0, 1, 1], [], []>} : vector<8x256xf32>, vector<256x512xf32>, vector<8x512xf32> -> vector<8x512xf32>
      %c0_53 = arith.constant 0 : index
      %c0_54 = arith.constant 0 : index
      %66 = vector.load %arg9[%c0_53, %c0_54] : memref<1x512xf32, #tpu.memory_space<vmem>>, vector<1x512xf32>
      %67 = vector.broadcast %66 : vector<1x512xf32> to vector<8x512xf32>
      %68 = arith.addf %65, %67 : vector<8x512xf32>
      %69 = vector.extract_strided_slice %68 {offsets = [0, 0], sizes = [8, 384], strides = [1, 1]} : vector<8x512xf32> to vector<8x384xf32>
      %70 = arith.negf %69 : vector<8x384xf32>
      %71 = math.exp %70 : vector<8x384xf32>
      %cst_55 = arith.constant 1.000000e+00 : f32
      %72 = vector.broadcast %cst_55 : f32 to vector<8x384xf32>
      %73 = arith.addf %72, %71 : vector<8x384xf32>
      %74 = arith.divf %72, %73 : vector<8x384xf32>
      %75 = vector.extract_strided_slice %74 {offsets = [0, 0], sizes = [8, 128], strides = [1, 1]} : vector<8x384xf32> to vector<8x128xf32>
      %76 = vector.extract_strided_slice %74 {offsets = [0, 128], sizes = [8, 128], strides = [1, 1]} : vector<8x384xf32> to vector<8x128xf32>
      %77 = vector.extract_strided_slice %74 {offsets = [0, 256], sizes = [8, 128], strides = [1, 1]} : vector<8x384xf32> to vector<8x128xf32>
      %78 = vector.extract_strided_slice %68 {offsets = [0, 384], sizes = [8, 128], strides = [1, 1]} : vector<8x512xf32> to vector<8x128xf32>
      %79 = math.tanh %78 : vector<8x128xf32>
      %80 = arith.mulf %62, %76 : vector<8x128xf32>
      %81 = arith.mulf %75, %79 : vector<8x128xf32>
      %82 = arith.addf %80, %81 : vector<8x128xf32>
      %83 = math.tanh %82 : vector<8x128xf32>
      %84 = arith.mulf %77, %83 : vector<8x128xf32>
      %c1_56 = arith.constant 1 : index
      %c0_57 = arith.constant 0 : index
      %c0_58 = arith.constant 0 : index
      %85 = vector.load %arg17[%c1_56, %c0_57, %c0_58] : memref<2x8x128xf32, #tpu.memory_space<vmem>>, vector<1x8x128xf32>
      %86 = vector.shape_cast %85 : vector<1x8x128xf32> to vector<8x128xf32>
      %87 = vector.shape_cast %84 : vector<8x128xf32> to vector<1x8x128xf32>
      tpu.vector_store %arg17[%c1_56, %c0_57, %c0_58], %87 {strides = array<i32>} : memref<2x8x128xf32, #tpu.memory_space<vmem>>, vector<1x8x128xf32>,
      %c1_59 = arith.constant 1 : index
      %c0_60 = arith.constant 0 : index
      %c0_61 = arith.constant 0 : index
      %88 = vector.load %arg18[%c1_59, %c0_60, %c0_61] : memref<2x8x128xf32, #tpu.memory_space<vmem>>, vector<1x8x128xf32>
      %89 = vector.shape_cast %88 : vector<1x8x128xf32> to vector<8x128xf32>
      %90 = vector.shape_cast %82 : vector<8x128xf32> to vector<1x8x128xf32>
      tpu.vector_store %arg18[%c1_59, %c0_60, %c0_61], %90 {strides = array<i32>} : memref<2x8x128xf32, #tpu.memory_space<vmem>>, vector<1x8x128xf32>,
      %91 = arith.index_cast %26 : i32 to index
      %c0_62 = arith.constant 0 : index
      %c0_63 = arith.constant 0 : index
      %92 = vector.load %arg16[%91, %c0_62, %c0_63] : memref<8x8x128xf32, #tpu.memory_space<vmem>>, vector<1x8x128xf32>
      %93 = vector.shape_cast %92 : vector<1x8x128xf32> to vector<8x128xf32>
      %94 = vector.shape_cast %84 : vector<8x128xf32> to vector<1x8x128xf32>
      tpu.vector_store %arg16[%91, %c0_62, %c0_63], %94 {strides = array<i32>} : memref<8x8x128xf32, #tpu.memory_space<vmem>>, vector<1x8x128xf32>,
    }
    %c8_i32_11 = arith.constant 8 : i32
    %c0_12 = arith.constant 0 : index
    %c0_13 = arith.constant 0 : index
    %c0_14 = arith.constant 0 : index
    %13 = vector.load %arg16[%c0_12, %c0_13, %c0_14] : memref<8x8x128xf32, #tpu.memory_space<vmem>>, vector<8x8x128xf32>
    %14 = vector.shape_cast %13 : vector<8x8x128xf32> to vector<64x128xf32>
    %c0_15 = arith.constant 0 : index
    %c0_16 = arith.constant 0 : index
    %15 = vector.load %arg10[%c0_15, %c0_16] : memref<128x128xf32, #tpu.memory_space<vmem>>, vector<128x128xf32>
    %cst_17 = arith.constant dense<0.000000e+00> : vector<64x128xf32>
    %16 = tpu.matmul %14, %15, %cst_17 {dimension_numbers = #tpu.dot_dimension_numbers<[1], [0], [0], [1], [0, 0, 1, 1], [], []>} : vector<64x128xf32>, vector<128x128xf32>, vector<64x128xf32> -> vector<64x128xf32>
    %c0_18 = arith.constant 0 : index
    %c0_19 = arith.constant 0 : index
    %17 = vector.load %arg11[%c0_18, %c0_19] : memref<1x128xf32, #tpu.memory_space<vmem>>, vector<1x128xf32>
    %18 = vector.broadcast %17 : vector<1x128xf32> to vector<64x128xf32>
    %19 = arith.addf %16, %18 : vector<64x128xf32>
    %20 = vector.shape_cast %19 : vector<64x128xf32> to vector<8x8x128xf32>
    %c0_20 = arith.constant 0 : index
    %c0_21 = arith.constant 0 : index
    %c0_22 = arith.constant 0 : index
    %21 = vector.load %arg12[%c0_20, %c0_21, %c0_22] : memref<8x8x128xf32, #tpu.memory_space<vmem>>, vector<8x8x128xf32>
    tpu.vector_store %arg12[%c0_20, %c0_21, %c0_22], %20 {strides = array<i32>} : memref<8x8x128xf32, #tpu.memory_space<vmem>>, vector<8x8x128xf32>,
    %c0_i32_23 = arith.constant 0 : i32
    %22 = arith.cmpi eq, %arg1, %c0_i32_23 : i32
    %23 = arith.extui %22 : i1 to i32
    %c0_i32_24 = arith.constant 0 : i32
    %24 = arith.cmpi ne, %23, %c0_i32_24 : i32
    scf.if %24 {
      %c0_25 = arith.constant 0 : index
      %c0_26 = arith.constant 0 : index
      %c0_27 = arith.constant 0 : index
      %25 = vector.load %arg17[%c0_25, %c0_26, %c0_27] : memref<2x8x128xf32, #tpu.memory_space<vmem>>, vector<2x8x128xf32>
      %c0_28 = arith.constant 0 : index
      %c0_29 = arith.constant 0 : index
      %c0_30 = arith.constant 0 : index
      %26 = vector.load %arg13[%c0_28, %c0_29, %c0_30] : memref<2x8x128xf32, #tpu.memory_space<vmem>>, vector<2x8x128xf32>
      tpu.vector_store %arg13[%c0_28, %c0_29, %c0_30], %25 {strides = array<i32>} : memref<2x8x128xf32, #tpu.memory_space<vmem>>, vector<2x8x128xf32>,
      %c0_31 = arith.constant 0 : index
      %c0_32 = arith.constant 0 : index
      %c0_33 = arith.constant 0 : index
      %27 = vector.load %arg18[%c0_31, %c0_32, %c0_33] : memref<2x8x128xf32, #tpu.memory_space<vmem>>, vector<2x8x128xf32>
      %c0_34 = arith.constant 0 : index
      %c0_35 = arith.constant 0 : index
      %c0_36 = arith.constant 0 : index
      %28 = vector.load %arg14[%c0_34, %c0_35, %c0_36] : memref<2x8x128xf32, #tpu.memory_space<vmem>>, vector<2x8x128xf32>
      tpu.vector_store %arg14[%c0_34, %c0_35, %c0_36], %27 {strides = array<i32>} : memref<2x8x128xf32, #tpu.memory_space<vmem>>, vector<2x8x128xf32>,
    } else {
    }
    return
  }
  func.func @transform_0(%arg0: i32, %arg1: i32) -> (i32, i32, i32) {
    %c0_i32 = arith.constant 0 : i32
    %c0_i32_0 = arith.constant 0 : i32
    return %arg1, %arg0, %c0_i32 : i32, i32, i32
  }
  func.func @transform_1(%arg0: i32, %arg1: i32) -> (i32, i32, i32) {
    %c0_i32 = arith.constant 0 : i32
    %c0_i32_0 = arith.constant 0 : i32
    %c0_i32_1 = arith.constant 0 : i32
    return %c0_i32, %arg0, %c0_i32_0 : i32, i32, i32
  }
  func.func @transform_2(%arg0: i32, %arg1: i32) -> (i32, i32, i32) {
    %c0_i32 = arith.constant 0 : i32
    %c0_i32_0 = arith.constant 0 : i32
    %c0_i32_1 = arith.constant 0 : i32
    return %c0_i32, %arg0, %c0_i32_0 : i32, i32, i32
  }
  func.func @transform_3(%arg0: i32, %arg1: i32) -> (i32, i32) {
    %c0_i32 = arith.constant 0 : i32
    %c0_i32_0 = arith.constant 0 : i32
    %c0_i32_1 = arith.constant 0 : i32
    return %c0_i32, %c0_i32_0 : i32, i32
  }
  func.func @transform_4(%arg0: i32, %arg1: i32) -> (i32, i32) {
    %c0_i32 = arith.constant 0 : i32
    %c0_i32_0 = arith.constant 0 : i32
    %c0_i32_1 = arith.constant 0 : i32
    return %c0_i32, %c0_i32_0 : i32, i32
  }
  func.func @transform_5(%arg0: i32, %arg1: i32) -> (i32, i32) {
    %c0_i32 = arith.constant 0 : i32
    %c0_i32_0 = arith.constant 0 : i32
    %c0_i32_1 = arith.constant 0 : i32
    return %c0_i32, %c0_i32_0 : i32, i32
  }
  func.func @transform_6(%arg0: i32, %arg1: i32) -> (i32, i32) {
    %c0_i32 = arith.constant 0 : i32
    %c0_i32_0 = arith.constant 0 : i32
    %c0_i32_1 = arith.constant 0 : i32
    return %c0_i32, %c0_i32_0 : i32, i32
  }
  func.func @transform_7(%arg0: i32, %arg1: i32) -> (i32, i32) {
    %c0_i32 = arith.constant 0 : i32
    %c0_i32_0 = arith.constant 0 : i32
    %c0_i32_1 = arith.constant 0 : i32
    return %c0_i32, %c0_i32_0 : i32, i32
  }
  func.func @transform_8(%arg0: i32, %arg1: i32) -> (i32, i32) {
    %c0_i32 = arith.constant 0 : i32
    %c0_i32_0 = arith.constant 0 : i32
    %c0_i32_1 = arith.constant 0 : i32
    return %c0_i32, %c0_i32_0 : i32, i32
  }
  func.func @transform_9(%arg0: i32, %arg1: i32) -> (i32, i32) {
    %c0_i32 = arith.constant 0 : i32
    %c0_i32_0 = arith.constant 0 : i32
    %c0_i32_1 = arith.constant 0 : i32
    return %c0_i32, %c0_i32_0 : i32, i32
  }
  func.func @transform_10(%arg0: i32, %arg1: i32) -> (i32, i32, i32) {
    %c0_i32 = arith.constant 0 : i32
    %c0_i32_0 = arith.constant 0 : i32
    return %arg1, %arg0, %c0_i32 : i32, i32, i32
  }
  func.func @transform_11(%arg0: i32, %arg1: i32) -> (i32, i32, i32) {
    %c0_i32 = arith.constant 0 : i32
    %c0_i32_0 = arith.constant 0 : i32
    %c0_i32_1 = arith.constant 0 : i32
    return %c0_i32, %arg0, %c0_i32_0 : i32, i32, i32
  }
  func.func @transform_12(%arg0: i32, %arg1: i32) -> (i32, i32, i32) {
    %c0_i32 = arith.constant 0 : i32
    %c0_i32_0 = arith.constant 0 : i32
    %c0_i32_1 = arith.constant 0 : i32
    return %c0_i32, %arg0, %c0_i32_0 : i32, i32, i32
  }
}

</mosaic_0001>

<bundles_post_ra>
// kernel: lstm_ario_forward.1
= control target key start
LH: loop header
LB: loop body
LE: loop exit
PB: predicated region body
PF: predicated region fallthrough
CT: control target
= control target key end

     0   :  { %s2181_s3 = inlined_call_operand.vmem [shape: f32[128,512], index: 3, kind: input, shape index: {}]   ;;  %s2182_s1 = inlined_call_operand.vmem [shape: f32[2,8,128], index: 1, kind: input, shape index: {}, may-alias: {1,2}]   ;;  %s2183_s2 = inlined_call_operand.vmem [shape: f32[2,8,128], index: 2, kind: input, shape index: {}, may-alias: {1,2}]   ;;  %s2184_s5 = inlined_call_operand.vmem [shape: f32[128,512], index: 5, kind: input, shape index: {}]   ;;  %s2185_s6 = inlined_call_operand.vmem [shape: f32[256,512], index: 6, kind: input, shape index: {}]   ;;  %s2186_s7 = inlined_call_operand.vmem [shape: f32[1,512], index: 7, kind: input, shape index: {}]   ;;  %s2187_s8 = inlined_call_operand.vmem [shape: f32[128,128], index: 8, kind: input, shape index: {}]   ;;  %s2188_s9 = inlined_call_operand.vmem [shape: f32[1,128], index: 9, kind: input, shape index: {}]   ;;  %s2189_s10 = inlined_call_operand.vmem [shape: f32[8,8,128], index: 10, kind: output, shape index: {0}]   ;;  %s2190_s11 = inlined_call_operand.vmem [shape: f32[2,8,128], index: 11, kind: output, shape index: {1}]   ;;  %s2191_s12 = inlined_call_operand.vmem [shape: f32[2,8,128], index: 12, kind: output, shape index: {2}]   ;;  %s2192_s0 = inlined_call_operand.vmem [shape: f32[8,8,128], index: 0, kind: input, shape index: {}]   ;;  %s2193_s4 = inlined_call_operand.vmem [shape: f32[1,512], index: 4, kind: input, shape index: {}]  }
   0x1   :  { %v120_v0 = vld [vmem:[%s2181_s3 + $0x1f0] sm:$0xff]  ;;  %v121_v1 = vld [vmem:[%s2181_s3 + $0x1f8] sm:$0xff]  ;;  %v42_v6 = vld [vmem:[%s2182_s1] sm:$0xff] }
   0x2   :  { %v116_v2 = vld [vmem:[%s2181_s3 + $0x1d0] sm:$0xff]  ;;  %214 = vmatpush.msra.mxu2 %v120_v0  ;;  %255 = vmatpush.msra.mxu3 %v121_v1  ;;  %v117_v3 = vld [vmem:[%s2181_s3 + $0x1d8] sm:$0xff]  ;;  %v43_v7 = vld [vmem:[%s2182_s1 + $0x8] sm:$0xff]  ;;  %44 = vst [vmem:[#allocation4] sm:$0xff] %v42_v6 }
   0x3   :  { %v112_v4 = vld [vmem:[%s2181_s3 + $0x1b0] sm:$0xff]  ;;  %v113_v5 = vld [vmem:[%s2181_s3 + $0x1b8] sm:$0xff]  ;;  %v46_v8 = vld [vmem:[%s2183_s2] sm:$0xff]  ;;  %45 = vst [vmem:[#allocation4 + $0x8] sm:$0xff] %v43_v7 }
   0x4   :  { %215 = vmatpush.msra.mxu2 %v116_v2  ;;  %256 = vmatpush.msra.mxu3 %v117_v3  ;;  %v47_v9 = vld [vmem:[%s2183_s2 + $0x8] sm:$0xff]  ;;  %v118_v10 = vld [vmem:[%s2181_s3 + $0x1e0] sm:$0xff]  ;;  %v108_v12 = vld [vmem:[%s2181_s3 + $0x190] sm:$0xff]  ;;  %48 = vst [vmem:[#allocation5 + $0x8] sm:$0xff] %v46_v8 }
   0x5   :  { %v119_v11 = vld [vmem:[%s2181_s3 + $0x1e8] sm:$0xff]  ;;  %132 = vmatpush.msra.mxu0 %v118_v10  ;;  %v109_v13 = vld [vmem:[%s2181_s3 + $0x198] sm:$0xff]  ;;  %v114_v14 = vld [vmem:[%s2181_s3 + $0x1c0] sm:$0xff]  ;;  %49 = vst [vmem:[#allocation5] sm:$0xff] %v47_v9 }
   0x6   :  { %173 = vmatpush.msra.mxu1 %v119_v11  ;;  %216 = vmatpush.msra.mxu2 %v112_v4  ;;  %v115_v15 = vld [vmem:[%s2181_s3 + $0x1c8] sm:$0xff]  ;;  %v104_v16 = vld [vmem:[%s2181_s3 + $0x170] sm:$0xff]  ;;  %v105_v17 = vld [vmem:[%s2181_s3 + $0x178] sm:$0xff] }
   0x7   :  { %257 = vmatpush.msra.mxu3 %v113_v5  ;;  %133 = vmatpush.msra.mxu0 %v114_v14  ;;  %v110_v18 = vld [vmem:[%s2181_s3 + $0x1a0] sm:$0xff]  ;;  %v111_v19 = vld [vmem:[%s2181_s3 + $0x1a8] sm:$0xff]  ;;  %v100_v22 = vld [vmem:[%s2181_s3 + $0x150] sm:$0xff] }
   0x8   :  { %174 = vmatpush.msra.mxu1 %v115_v15  ;;  %217 = vmatpush.msra.mxu2 %v108_v12  ;;  %v106_v20 = vld [vmem:[%s2181_s3 + $0x180] sm:$0xff]  ;;  %v107_v21 = vld [vmem:[%s2181_s3 + $0x188] sm:$0xff]  ;;  %v101_v23 = vld [vmem:[%s2181_s3 + $0x158] sm:$0xff] }
   0x9   :  { %258 = vmatpush.msra.mxu3 %v109_v13  ;;  %134 = vmatpush.msra.mxu0 %v110_v18  ;;  %v102_v24 = vld [vmem:[%s2181_s3 + $0x160] sm:$0xff]  ;;  %v103_v25 = vld [vmem:[%s2181_s3 + $0x168] sm:$0xff]  ;;  %v96_v26 = vld [vmem:[%s2181_s3 + $0x130] sm:$0xff] }
   0xa   :  { %175 = vmatpush.msra.mxu1 %v111_v19  ;;  %218 = vmatpush.msra.mxu2 %v104_v16  ;;  %v97_v27 = vld [vmem:[%s2181_s3 + $0x138] sm:$0xff]  ;;  %v98_v28 = vld [vmem:[%s2181_s3 + $0x140] sm:$0xff]  ;;  %v99_v29 = vld [vmem:[%s2181_s3 + $0x148] sm:$0xff] }
   0xb   :  { %259 = vmatpush.msra.mxu3 %v105_v17  ;;  %135 = vmatpush.msra.mxu0 %v106_v20  ;;  %v92_v30 = vld [vmem:[%s2181_s3 + $0x110] sm:$0xff]  ;;  %v93_v31 = vld [vmem:[%s2181_s3 + $0x118] sm:$0xff]  ;;  %v94_v32 = vld [vmem:[%s2181_s3 + $0x120] sm:$0xff] }
   0xc   :  { %176 = vmatpush.msra.mxu1 %v107_v21  ;;  %219 = vmatpush.msra.mxu2 %v100_v22  ;;  %v95_v33 = vld [vmem:[%s2181_s3 + $0x128] sm:$0xff]  ;;  %v88_v34 = vld [vmem:[%s2181_s3 + $0xf0] sm:$0xff]  ;;  %v89_v35 = vld [vmem:[%s2181_s3 + $0xf8] sm:$0xff] }
   0xd   :  { %260 = vmatpush.msra.mxu3 %v101_v23  ;;  %136 = vmatpush.msra.mxu0 %v102_v24  ;;  %v90_v36 = vld [vmem:[%s2181_s3 + $0x100] sm:$0xff]  ;;  %v91_v37 = vld [vmem:[%s2181_s3 + $0x108] sm:$0xff]  ;;  %v84_v38 = vld [vmem:[%s2181_s3 + $0xd0] sm:$0xff] }
   0xe   :  { %177 = vmatpush.msra.mxu1 %v103_v25  ;;  %220 = vmatpush.msra.mxu2 %v96_v26  ;;  %v85_v39 = vld [vmem:[%s2181_s3 + $0xd8] sm:$0xff]  ;;  %v86_v40 = vld [vmem:[%s2181_s3 + $0xe0] sm:$0xff]  ;;  %v87_v41 = vld [vmem:[%s2181_s3 + $0xe8] sm:$0xff] }
   0xf   :  { %261 = vmatpush.msra.mxu3 %v97_v27  ;;  %137 = vmatpush.msra.mxu0 %v98_v28  ;;  %v80_v42 = vld [vmem:[%s2181_s3 + $0xb0] sm:$0xff]  ;;  %v81_v43 = vld [vmem:[%s2181_s3 + $0xb8] sm:$0xff]  ;;  %v82_v44 = vld [vmem:[%s2181_s3 + $0xc0] sm:$0xff] }
  0x10   :  { %178 = vmatpush.msra.mxu1 %v99_v29  ;;  %221 = vmatpush.msra.mxu2 %v92_v30  ;;  %v83_v45 = vld [vmem:[%s2181_s3 + $0xc8] sm:$0xff]  ;;  %v76_v46 = vld [vmem:[%s2181_s3 + $0x90] sm:$0xff]  ;;  %v77_v47 = vld [vmem:[%s2181_s3 + $0x98] sm:$0xff] }
  0x11   :  { %262 = vmatpush.msra.mxu3 %v93_v31  ;;  %138 = vmatpush.msra.mxu0 %v94_v32  ;;  %v78_v48 = vld [vmem:[%s2181_s3 + $0xa0] sm:$0xff]  ;;  %v79_v49 = vld [vmem:[%s2181_s3 + $0xa8] sm:$0xff]  ;;  %v72_v50 = vld [vmem:[%s2181_s3 + $0x70] sm:$0xff] }
  0x12   :  { %179 = vmatpush.msra.mxu1 %v95_v33  ;;  %222 = vmatpush.msra.mxu2 %v88_v34  ;;  %v73_v51 = vld [vmem:[%s2181_s3 + $0x78] sm:$0xff]  ;;  %v74_v52 = vld [vmem:[%s2181_s3 + $0x80] sm:$0xff]  ;;  %v75_v53 = vld [vmem:[%s2181_s3 + $0x88] sm:$0xff] }
  0x13   :  { %263 = vmatpush.msra.mxu3 %v89_v35  ;;  %139 = vmatpush.msra.mxu0 %v90_v36  ;;  %v68_v54 = vld [vmem:[%s2181_s3 + $0x50] sm:$0xff]  ;;  %v69_v55 = vld [vmem:[%s2181_s3 + $0x58] sm:$0xff]  ;;  %v70_v56 = vld [vmem:[%s2181_s3 + $0x60] sm:$0xff] }
  0x14   :  { %180 = vmatpush.msra.mxu1 %v91_v37  ;;  %223 = vmatpush.msra.mxu2 %v84_v38  ;;  %v71_v57 = vld [vmem:[%s2181_s3 + $0x68] sm:$0xff]  ;;  %v64_v58 = vld [vmem:[%s2181_s3 + $0x30] sm:$0xff]  ;;  %v65_v59 = vld [vmem:[%s2181_s3 + $0x38] sm:$0xff] }
  0x15   :  { %264 = vmatpush.msra.mxu3 %v85_v39  ;;  %140 = vmatpush.msra.mxu0 %v86_v40  ;;  %v66_v60 = vld [vmem:[%s2181_s3 + $0x40] sm:$0xff]  ;;  %v67_v61 = vld [vmem:[%s2181_s3 + $0x48] sm:$0xff]  ;;  %v60_v62 = vld [vmem:[%s2181_s3 + $0x10] sm:$0xff] }
  0x16   :  { %181 = vmatpush.msra.mxu1 %v87_v41  ;;  %224 = vmatpush.msra.mxu2 %v80_v42  ;;  %v61_v63 = vld [vmem:[%s2181_s3 + $0x18] sm:$0xff]  ;;  %v50_v0 = vld [vmem:[%s2192_s0] sm:$0xff]  ;;  %v63_v2 = vld [vmem:[%s2181_s3 + $0x28] sm:$0xff] }
  0x17   :  { %265 = vmatpush.msra.mxu3 %v81_v43  ;;  %141 = vmatpush.msra.mxu0 %v82_v44  ;;  %v62_v1 = vld [vmem:[%s2181_s3 + $0x20] sm:$0xff]  ;;  %v59_v4 = vld [vmem:[%s2181_s3 + $0x8] sm:$0xff]  ;;  %v52_v6 = vld [vmem:[%s2192_s0 + $0x10] sm:$0xff] }
  0x18   :  { %182 = vmatpush.msra.mxu1 %v83_v45  ;;  %225 = vmatpush.msra.mxu2 %v76_v46  ;;  %v58_v3 = vld [vmem:[%s2181_s3] sm:$0xff]  ;;  %v51_v5 = vld [vmem:[%s2192_s0 + $0x8] sm:$0xff]  ;;  %v53_v7 = vld [vmem:[%s2192_s0 + $0x18] sm:$0xff] }
  0x19   :  { %266 = vmatpush.msra.mxu3 %v77_v47  ;;  %142 = vmatpush.msra.mxu0 %v78_v48  ;;  %v54_v8 = vld [vmem:[%s2192_s0 + $0x20] sm:$0xff]  ;;  %v55_v9 = vld [vmem:[%s2192_s0 + $0x28] sm:$0xff]  ;;  %v56_v10 = vld [vmem:[%s2192_s0 + $0x30] sm:$0xff] }
  0x1a   :  { %183 = vmatpush.msra.mxu1 %v79_v49  ;;  %226 = vmatpush.msra.mxu2 %v72_v50  ;;  %v57_v11 = vld [vmem:[%s2192_s0 + $0x38] sm:$0xff]  ;;  %v122_v12 = vld [vmem:[%s2193_s4] sm:$0xf]  ;;  %s1478_s0 = smov 0  }
  0x1b   :  { %267 = vmatpush.msra.mxu3 %v73_v51  ;;  %143 = vmatpush.msra.mxu0 %v74_v52  ;;  %v1438_v13 = vperm.slane %v122_v12, 0  ;;  %v1440_v14 = vperm.slane %v122_v12, 1  ;;  %v1442_v15 = vperm.slane %v122_v12, 2  ;;  %v1444_v16 = vperm.slane %v122_v12, 3 }
  0x1c   :  { %184 = vmatpush.msra.mxu1 %v75_v53  ;;  %227 = vmatpush.msra.mxu2 %v68_v54 }
  0x1d   :  { %268 = vmatpush.msra.mxu3 %v69_v55  ;;  %144 = vmatpush.msra.mxu0 %v70_v56 }
  0x1e   :  { %185 = vmatpush.msra.mxu1 %v71_v57  ;;  %228 = vmatpush.msra.mxu2 %v64_v58 }
  0x1f   :  { %269 = vmatpush.msra.mxu3 %v65_v59  ;;  %145 = vmatpush.msra.mxu0 %v66_v60 }
  0x20   :  { %186 = vmatpush.msra.mxu1 %v67_v61  ;;  %229 = vmatpush.msra.mxu2 %v60_v62 }
  0x21   :  { %270 = vmatpush.msra.mxu3 %v61_v63  ;;  %230 = vmatmul.f32.vlgmr.msra.gmra.mxu2 %v50_v0 }
  0x22   :  { %271 = vmatmul.f32.vlgmr.msra.gmra.mxu3 %v50_v0  ;;  %146 = vmatpush.msra.mxu0 %v62_v1 }
  0x23   :  { %187 = vmatpush.msra.mxu1 %v63_v2 }
  0x24   :  { %147 = vmatpush.msra.mxu0 %v58_v3 }
  0x25   :  { %188 = vmatpush.msra.mxu1 %v59_v4  ;;  %148 = vmatmul.f32.vlgmr.msra.gmra.mxu0 %v50_v0 }
  0x26   :  { %189 = vmatmul.f32.vlgmr.msra.gmra.mxu1 %v50_v0 }
  0x29   :  { %233 = vmatmul.f32.gmra.mxu2 %v51_v5 }
  0x2a   :  { %274 = vmatmul.f32.gmra.mxu3 %v51_v5 }
  0x2d   :  { %151 = vmatmul.f32.gmra.mxu0 %v51_v5 }
  0x2e   :  { %192 = vmatmul.f32.gmra.mxu1 %v51_v5 }
  0x31   :  { %236 = vmatmul.f32.gmra.mxu2 %v52_v6 }
  0x32   :  { %277 = vmatmul.f32.gmra.mxu3 %v52_v6 }
  0x35   :  { %154 = vmatmul.f32.gmra.mxu0 %v52_v6 }
  0x36   :  { %195 = vmatmul.f32.gmra.mxu1 %v52_v6 }
  0x39   :  { %239 = vmatmul.f32.gmra.mxu2 %v53_v7 }
  0x3a   :  { %280 = vmatmul.f32.gmra.mxu3 %v53_v7 }
  0x3d   :  { %157 = vmatmul.f32.gmra.mxu0 %v53_v7 }
  0x3e   :  { %198 = vmatmul.f32.gmra.mxu1 %v53_v7 }
  0x41   :  { %242 = vmatmul.f32.gmra.mxu2 %v54_v8 }
  0x42   :  { %283 = vmatmul.f32.gmra.mxu3 %v54_v8 }
  0x45   :  { %160 = vmatmul.f32.gmra.mxu0 %v54_v8 }
  0x46   :  { %201 = vmatmul.f32.gmra.mxu1 %v54_v8 }
  0x49   :  { %245 = vmatmul.f32.gmra.mxu2 %v55_v9 }
  0x4a   :  { %286 = vmatmul.f32.gmra.mxu3 %v55_v9 }
  0x4d   :  { %163 = vmatmul.f32.gmra.mxu0 %v55_v9 }
  0x4e   :  { %204 = vmatmul.f32.gmra.mxu1 %v55_v9 }
  0x51   :  { %248 = vmatmul.f32.gmra.mxu2 %v56_v10 }
  0x52   :  { %289 = vmatmul.f32.gmra.mxu3 %v56_v10 }
  0x55   :  { %166 = vmatmul.f32.gmra.mxu0 %v56_v10 }
  0x56   :  { %207 = vmatmul.f32.gmra.mxu1 %v56_v10 }
  0x59   :  { %251 = vmatmul.f32.gmra.mxu2 %v57_v11 }
  0x5a   :  { %292 = vmatmul.f32.gmra.mxu3 %v57_v11 }
  0x5d   :  { %169 = vmatmul.f32.gmra.mxu0 %v57_v11 }
  0x5e   :  { %210 = vmatmul.f32.gmra.mxu1 %v57_v11 }
  0xa2   :  { %v149_v17 = vpop.f32.mrf.mxu0 }
  0xa3   :  { %v190_v18 = vpop.f32.mrf.mxu1  ;;  %v150_v19 = vadd.f32 %v149_v17, %v1438_v13 }
  0xa4   :  { %v191_v20 = vadd.f32 %v190_v18, %v1440_v14  ;;  %v231_v21 = vpop.f32.mrf.mxu2 }
  0xa5   :  { %v272_v22 = vpop.f32.mrf.mxu3  ;;  %296 = vst [vmem:[#allocation2] sm:$0xff] %v150_v19  ;;  %v232_v23 = vadd.f32 %v231_v21, %v1442_v15 }
  0xa6   :  { %v273_v24 = vadd.f32 %v272_v22, %v1444_v16  ;;  %297 = vst [vmem:[#allocation2 + $0x8] sm:$0xff] %v191_v20 }
  0xa7   :  { %298 = vst [vmem:[#allocation2 + $0x10] sm:$0xff] %v232_v23 }
  0xa8   :  { %299 = vst [vmem:[#allocation2 + $0x18] sm:$0xff] %v273_v24 }
  0xaa   :  { %v152_v25 = vpop.f32.mrf.mxu0 }
  0xab   :  { %v193_v26 = vpop.f32.mrf.mxu1  ;;  %v153_v27 = vadd.f32 %v152_v25, %v1438_v13 }
  0xac   :  { %v194_v28 = vadd.f32 %v193_v26, %v1440_v14  ;;  %v234_v29 = vpop.f32.mrf.mxu2 }
  0xad   :  { %v275_v30 = vpop.f32.mrf.mxu3  ;;  %300 = vst [vmem:[#allocation2 + $0x20] sm:$0xff] %v153_v27  ;;  %v235_v31 = vadd.f32 %v234_v29, %v1442_v15 }
  0xae   :  { %v276_v32 = vadd.f32 %v275_v30, %v1444_v16  ;;  %301 = vst [vmem:[#allocation2 + $0x28] sm:$0xff] %v194_v28 }
  0xaf   :  { %302 = vst [vmem:[#allocation2 + $0x30] sm:$0xff] %v235_v31 }
  0xb0   :  { %303 = vst [vmem:[#allocation2 + $0x38] sm:$0xff] %v276_v32 }
  0xb2   :  { %v155_v33 = vpop.f32.mrf.mxu0 }
  0xb3   :  { %v196_v34 = vpop.f32.mrf.mxu1  ;;  %v156_v35 = vadd.f32 %v155_v33, %v1438_v13 }
  0xb4   :  { %v197_v36 = vadd.f32 %v196_v34, %v1440_v14  ;;  %v237_v37 = vpop.f32.mrf.mxu2 }
  0xb5   :  { %v278_v38 = vpop.f32.mrf.mxu3  ;;  %304 = vst [vmem:[#allocation2 + $0x40] sm:$0xff] %v156_v35  ;;  %v238_v39 = vadd.f32 %v237_v37, %v1442_v15 }
  0xb6   :  { %v279_v40 = vadd.f32 %v278_v38, %v1444_v16  ;;  %305 = vst [vmem:[#allocation2 + $0x48] sm:$0xff] %v197_v36 }
  0xb7   :  { %306 = vst [vmem:[#allocation2 + $0x50] sm:$0xff] %v238_v39 }
  0xb8   :  { %307 = vst [vmem:[#allocation2 + $0x58] sm:$0xff] %v279_v40 }
  0xba   :  { %v158_v41 = vpop.f32.mrf.mxu0 }
  0xbb   :  { %v199_v42 = vpop.f32.mrf.mxu1  ;;  %v159_v43 = vadd.f32 %v158_v41, %v1438_v13 }
  0xbc   :  { %v200_v44 = vadd.f32 %v199_v42, %v1440_v14  ;;  %v240_v45 = vpop.f32.mrf.mxu2 }
  0xbd   :  { %v281_v46 = vpop.f32.mrf.mxu3  ;;  %308 = vst [vmem:[#allocation2 + $0x60] sm:$0xff] %v159_v43  ;;  %v241_v47 = vadd.f32 %v240_v45, %v1442_v15 }
  0xbe   :  { %v282_v48 = vadd.f32 %v281_v46, %v1444_v16  ;;  %309 = vst [vmem:[#allocation2 + $0x68] sm:$0xff] %v200_v44 }
  0xbf   :  { %310 = vst [vmem:[#allocation2 + $0x70] sm:$0xff] %v241_v47 }
  0xc0   :  { %311 = vst [vmem:[#allocation2 + $0x78] sm:$0xff] %v282_v48 }
  0xc2   :  { %v161_v49 = vpop.f32.mrf.mxu0 }
  0xc3   :  { %v202_v50 = vpop.f32.mrf.mxu1  ;;  %v162_v51 = vadd.f32 %v161_v49, %v1438_v13 }
  0xc4   :  { %v203_v52 = vadd.f32 %v202_v50, %v1440_v14  ;;  %v243_v53 = vpop.f32.mrf.mxu2 }
  0xc5   :  { %v284_v54 = vpop.f32.mrf.mxu3  ;;  %312 = vst [vmem:[#allocation2 + $0x80] sm:$0xff] %v162_v51  ;;  %v244_v55 = vadd.f32 %v243_v53, %v1442_v15 }
  0xc6   :  { %v285_v56 = vadd.f32 %v284_v54, %v1444_v16  ;;  %313 = vst [vmem:[#allocation2 + $0x88] sm:$0xff] %v203_v52 }
  0xc7   :  { %314 = vst [vmem:[#allocation2 + $0x90] sm:$0xff] %v244_v55 }
  0xc8   :  { %315 = vst [vmem:[#allocation2 + $0x98] sm:$0xff] %v285_v56 }
  0xca   :  { %v164_v57 = vpop.f32.mrf.mxu0 }
  0xcb   :  { %v205_v58 = vpop.f32.mrf.mxu1  ;;  %v165_v59 = vadd.f32 %v164_v57, %v1438_v13 }
  0xcc   :  { %v206_v60 = vadd.f32 %v205_v58, %v1440_v14  ;;  %v246_v61 = vpop.f32.mrf.mxu2 }
  0xcd   :  { %v287_v62 = vpop.f32.mrf.mxu3  ;;  %316 = vst [vmem:[#allocation2 + $0xa0] sm:$0xff] %v165_v59  ;;  %v247_v63 = vadd.f32 %v246_v61, %v1442_v15 }
  0xce   :  { %v288_v0 = vadd.f32 %v287_v62, %v1444_v16  ;;  %317 = vst [vmem:[#allocation2 + $0xa8] sm:$0xff] %v206_v60 }
  0xcf   :  { %318 = vst [vmem:[#allocation2 + $0xb0] sm:$0xff] %v247_v63 }
  0xd0   :  { %319 = vst [vmem:[#allocation2 + $0xb8] sm:$0xff] %v288_v0 }
  0xd2   :  { %v167_v1 = vpop.f32.mrf.mxu0 }
  0xd3   :  { %v208_v2 = vpop.f32.mrf.mxu1  ;;  %v168_v3 = vadd.f32 %v167_v1, %v1438_v13 }
  0xd4   :  { %v209_v4 = vadd.f32 %v208_v2, %v1440_v14  ;;  %v249_v5 = vpop.f32.mrf.mxu2 }
  0xd5   :  { %v290_v6 = vpop.f32.mrf.mxu3  ;;  %320 = vst [vmem:[#allocation2 + $0xc0] sm:$0xff] %v168_v3  ;;  %v250_v7 = vadd.f32 %v249_v5, %v1442_v15 }
  0xd6   :  { %v291_v8 = vadd.f32 %v290_v6, %v1444_v16  ;;  %321 = vst [vmem:[#allocation2 + $0xc8] sm:$0xff] %v209_v4 }
  0xd7   :  { %322 = vst [vmem:[#allocation2 + $0xd0] sm:$0xff] %v250_v7 }
  0xd8   :  { %323 = vst [vmem:[#allocation2 + $0xd8] sm:$0xff] %v291_v8 }
  0xda   :  { %v170_v9 = vpop.f32.mrf.mxu0 }
  0xdb   :  { %v211_v10 = vpop.f32.mrf.mxu1  ;;  %v171_v11 = vadd.f32 %v170_v9, %v1438_v13 }
  0xdc   :  { %v212_v12 = vadd.f32 %v211_v10, %v1440_v14  ;;  %v252_v17 = vpop.f32.mrf.mxu2 }
  0xdd   :  { %v293_v18 = vpop.f32.mrf.mxu3  ;;  %324 = vst [vmem:[#allocation2 + $0xe0] sm:$0xff] %v171_v11  ;;  %v253_v19 = vadd.f32 %v252_v17, %v1442_v15 }
  0xde   :  { %v294_v20 = vadd.f32 %v293_v18, %v1444_v16  ;;  %325 = vst [vmem:[#allocation2 + $0xe8] sm:$0xff] %v212_v12 }
  0xdf   :  { %326 = vst [vmem:[#allocation2 + $0xf0] sm:$0xff] %v253_v19 }
  0xe0   :  { %327 = vst [vmem:[#allocation2 + $0xf8] sm:$0xff] %v294_v20 }
  0xe1 LB: > { %v403_v13 = vld [vmem:[%s2184_s5 + $0x1e0] sm:$0xff]  ;;  %v404_v14 = vld [vmem:[%s2184_s5 + $0x1e8] sm:$0xff]  ;;  %v405_v15 = vld [vmem:[%s2184_s5 + $0x1f0] sm:$0xff]  ;;  %s1044_s27 = sshll.u32 %s1140_s0, 5  ;;  %s1140_s0 = sphi %s1478_s0, %s333_s0  }
  0xe2   : > { %407 = vmatpush.msra.mxu0 %v403_v13  ;;  %427 = vmatpush.msra.mxu1 %v404_v14  ;;  %v399_v16 = vld [vmem:[%s2184_s5 + $0x1c0] sm:$0xff]  ;;  %v400_v21 = vld [vmem:[%s2184_s5 + $0x1c8] sm:$0xff]  ;;  %v401_v22 = vld [vmem:[%s2184_s5 + $0x1d0] sm:$0xff]  ;;  %s1907_s14 = scalar_lea.vmem [#allocation2], %s1044_s27 }
  0xe3   : > { %447 = vmatpush.msra.mxu2 %v405_v15  ;;  %v395_v23 = vld [vmem:[%s2184_s5 + $0x1a0] sm:$0xff]  ;;  %v396_v24 = vld [vmem:[%s2184_s5 + $0x1a8] sm:$0xff]  ;;  %v397_v25 = vld [vmem:[%s2184_s5 + $0x1b0] sm:$0xff] }
  0xe4   : > { %408 = vmatpush.msra.mxu0 %v399_v16  ;;  %428 = vmatpush.msra.mxu1 %v400_v21  ;;  %v391_v26 = vld [vmem:[%s2184_s5 + $0x180] sm:$0xff]  ;;  %v392_v27 = vld [vmem:[%s2184_s5 + $0x188] sm:$0xff]  ;;  %v393_v28 = vld [vmem:[%s2184_s5 + $0x190] sm:$0xff] }
  0xe5   : > { %448 = vmatpush.msra.mxu2 %v401_v22  ;;  %v387_v29 = vld [vmem:[%s2184_s5 + $0x160] sm:$0xff]  ;;  %v388_v30 = vld [vmem:[%s2184_s5 + $0x168] sm:$0xff]  ;;  %v389_v31 = vld [vmem:[%s2184_s5 + $0x170] sm:$0xff] }
  0xe6   : > { %409 = vmatpush.msra.mxu0 %v395_v23  ;;  %429 = vmatpush.msra.mxu1 %v396_v24  ;;  %v383_v32 = vld [vmem:[%s2184_s5 + $0x140] sm:$0xff]  ;;  %v384_v33 = vld [vmem:[%s2184_s5 + $0x148] sm:$0xff]  ;;  %v406_v34 = vld [vmem:[%s2184_s5 + $0x1f8] sm:$0xff] }
  0xe7   : > { %449 = vmatpush.msra.mxu2 %v397_v25  ;;  %v385_v35 = vld [vmem:[%s2184_s5 + $0x150] sm:$0xff]  ;;  %v402_v36 = vld [vmem:[%s2184_s5 + $0x1d8] sm:$0xff]  ;;  %v379_v37 = vld [vmem:[%s2184_s5 + $0x120] sm:$0xff]  ;;  %467 = vmatpush.msra.mxu3 %v406_v34 }
  0xe8   : > { %410 = vmatpush.msra.mxu0 %v391_v26  ;;  %430 = vmatpush.msra.mxu1 %v392_v27  ;;  %v380_v38 = vld [vmem:[%s2184_s5 + $0x128] sm:$0xff]  ;;  %v381_v39 = vld [vmem:[%s2184_s5 + $0x130] sm:$0xff]  ;;  %v398_v40 = vld [vmem:[%s2184_s5 + $0x1b8] sm:$0xff] }
  0xe9   : > { %450 = vmatpush.msra.mxu2 %v393_v28  ;;  %v375_v41 = vld [vmem:[%s2184_s5 + $0x100] sm:$0xff]  ;;  %v376_v42 = vld [vmem:[%s2184_s5 + $0x108] sm:$0xff]  ;;  %468 = vmatpush.msra.mxu3 %v402_v36  ;;  %v377_v43 = vld [vmem:[%s2184_s5 + $0x110] sm:$0xff] }
  0xea   : > { %411 = vmatpush.msra.mxu0 %v387_v29  ;;  %431 = vmatpush.msra.mxu1 %v388_v30  ;;  %v394_v44 = vld [vmem:[%s2184_s5 + $0x198] sm:$0xff]  ;;  %v371_v45 = vld [vmem:[%s2184_s5 + $0xe0] sm:$0xff]  ;;  %v372_v46 = vld [vmem:[%s2184_s5 + $0xe8] sm:$0xff] }
  0xeb   : > { %451 = vmatpush.msra.mxu2 %v389_v31  ;;  %469 = vmatpush.msra.mxu3 %v398_v40  ;;  %v373_v47 = vld [vmem:[%s2184_s5 + $0xf0] sm:$0xff]  ;;  %v390_v48 = vld [vmem:[%s2184_s5 + $0x178] sm:$0xff]  ;;  %v367_v49 = vld [vmem:[%s2184_s5 + $0xc0] sm:$0xff] }
  0xec   : > { %412 = vmatpush.msra.mxu0 %v383_v32  ;;  %432 = vmatpush.msra.mxu1 %v384_v33  ;;  %v368_v50 = vld [vmem:[%s2184_s5 + $0xc8] sm:$0xff]  ;;  %v369_v51 = vld [vmem:[%s2184_s5 + $0xd0] sm:$0xff]  ;;  %v386_v52 = vld [vmem:[%s2184_s5 + $0x158] sm:$0xff] }
  0xed   : > { %452 = vmatpush.msra.mxu2 %v385_v35  ;;  %470 = vmatpush.msra.mxu3 %v394_v44  ;;  %v363_v53 = vld [vmem:[%s2184_s5 + $0xa0] sm:$0xff]  ;;  %v364_v54 = vld [vmem:[%s2184_s5 + $0xa8] sm:$0xff]  ;;  %v365_v55 = vld [vmem:[%s2184_s5 + $0xb0] sm:$0xff] }
  0xee   : > { %413 = vmatpush.msra.mxu0 %v379_v37  ;;  %433 = vmatpush.msra.mxu1 %v380_v38  ;;  %v382_v56 = vld [vmem:[%s2184_s5 + $0x138] sm:$0xff]  ;;  %v359_v57 = vld [vmem:[%s2184_s5 + $0x80] sm:$0xff]  ;;  %v360_v58 = vld [vmem:[%s2184_s5 + $0x88] sm:$0xff] }
  0xef   : > { %453 = vmatpush.msra.mxu2 %v381_v39  ;;  %471 = vmatpush.msra.mxu3 %v390_v48  ;;  %v361_v59 = vld [vmem:[%s2184_s5 + $0x90] sm:$0xff]  ;;  %v378_v60 = vld [vmem:[%s2184_s5 + $0x118] sm:$0xff]  ;;  %v355_v61 = vld [vmem:[%s2184_s5 + $0x60] sm:$0xff] }
  0xf0   : > { %414 = vmatpush.msra.mxu0 %v375_v41  ;;  %434 = vmatpush.msra.mxu1 %v376_v42  ;;  %v356_v62 = vld [vmem:[%s2184_s5 + $0x68] sm:$0xff]  ;;  %v357_v63 = vld [vmem:[%s2184_s5 + $0x70] sm:$0xff]  ;;  %v374_v0 = vld [vmem:[%s2184_s5 + $0xf8] sm:$0xff] }
  0xf1   : > { %454 = vmatpush.msra.mxu2 %v377_v43  ;;  %472 = vmatpush.msra.mxu3 %v386_v52  ;;  %v351_v1 = vld [vmem:[%s2184_s5 + $0x40] sm:$0xff]  ;;  %v352_v2 = vld [vmem:[%s2184_s5 + $0x48] sm:$0xff]  ;;  %v353_v3 = vld [vmem:[%s2184_s5 + $0x50] sm:$0xff] }
  0xf2   : > { %415 = vmatpush.msra.mxu0 %v371_v45  ;;  %435 = vmatpush.msra.mxu1 %v372_v46  ;;  %v370_v4 = vld [vmem:[%s2184_s5 + $0xd8] sm:$0xff]  ;;  %v347_v5 = vld [vmem:[%s2184_s5 + $0x20] sm:$0xff]  ;;  %v348_v6 = vld [vmem:[%s2184_s5 + $0x28] sm:$0xff] }
  0xf3   : > { %455 = vmatpush.msra.mxu2 %v373_v47  ;;  %473 = vmatpush.msra.mxu3 %v382_v56  ;;  %v349_v7 = vld [vmem:[%s2184_s5 + $0x30] sm:$0xff]  ;;  %v366_v8 = vld [vmem:[%s2184_s5 + $0xb8] sm:$0xff]  ;;  %v343_v9 = vld [vmem:[%s2184_s5] sm:$0xff] }
  0xf4   : > { %416 = vmatpush.msra.mxu0 %v367_v49  ;;  %436 = vmatpush.msra.mxu1 %v368_v50  ;;  %v344_v10 = vld [vmem:[%s2184_s5 + $0x8] sm:$0xff]  ;;  %v345_v11 = vld [vmem:[%s2184_s5 + $0x10] sm:$0xff]  ;;  %v334_v12 = vld [vmem:[#allocation4] sm:$0xff] }
  0xf5   : > { %456 = vmatpush.msra.mxu2 %v369_v51  ;;  %474 = vmatpush.msra.mxu3 %v378_v60  ;;  %v362_v17 = vld [vmem:[%s2184_s5 + $0x98] sm:$0xff]  ;;  %v620_v18 = vld [vmem:[%s2185_s6 + $0x1e0] sm:$0xff]  ;;  %v621_v19 = vld [vmem:[%s2185_s6 + $0x1e8] sm:$0xff] }
  0xf6   : > { %417 = vmatpush.msra.mxu0 %v363_v53  ;;  %437 = vmatpush.msra.mxu1 %v364_v54  ;;  %v684_v20 = vld [vmem:[%s2185_s6 + $0x3e0] sm:$0xff]  ;;  %v358_v13 = vld [vmem:[%s2184_s5 + $0x78] sm:$0xff]  ;;  %v617_v15 = vld [vmem:[%s2185_s6 + $0x1c8] sm:$0xff] }
  0xf7   : > { %457 = vmatpush.msra.mxu2 %v365_v55  ;;  %475 = vmatpush.msra.mxu3 %v374_v0  ;;  %v616_v14 = vld [vmem:[%s2185_s6 + $0x1c0] sm:$0xff]  ;;  %v354_v21 = vld [vmem:[%s2184_s5 + $0x58] sm:$0xff]  ;;  %v613_v23 = vld [vmem:[%s2185_s6 + $0x1a8] sm:$0xff] }
  0xf8   : > { %418 = vmatpush.msra.mxu0 %v359_v57  ;;  %438 = vmatpush.msra.mxu1 %v360_v58  ;;  %v680_v16 = vld [vmem:[%s2185_s6 + $0x3c0] sm:$0xff]  ;;  %v350_v25 = vld [vmem:[%s2184_s5 + $0x38] sm:$0xff]  ;;  %v609_v27 = vld [vmem:[%s2185_s6 + $0x188] sm:$0xff] }
  0xf9   : > { %458 = vmatpush.msra.mxu2 %v361_v59  ;;  %476 = vmatpush.msra.mxu3 %v370_v4  ;;  %v612_v22 = vld [vmem:[%s2185_s6 + $0x1a0] sm:$0xff]  ;;  %v346_v29 = vld [vmem:[%s2184_s5 + $0x18] sm:$0xff]  ;;  %v605_v31 = vld [vmem:[%s2185_s6 + $0x168] sm:$0xff] }
  0xfa   : > { %419 = vmatpush.msra.mxu0 %v355_v61  ;;  %439 = vmatpush.msra.mxu1 %v356_v62  ;;  %v676_v24 = vld [vmem:[%s2185_s6 + $0x3a0] sm:$0xff]  ;;  %v685_v32 = vld [vmem:[%s2185_s6 + $0x3e8] sm:$0xff] }
  0xfb   : > { %459 = vmatpush.msra.mxu2 %v357_v63  ;;  %477 = vmatpush.msra.mxu3 %v366_v8  ;;  %v608_v26 = vld [vmem:[%s2185_s6 + $0x180] sm:$0xff]  ;;  %v681_v33 = vld [vmem:[%s2185_s6 + $0x3c8] sm:$0xff] }
  0xfc   : > { %420 = vmatpush.msra.mxu0 %v351_v1  ;;  %440 = vmatpush.msra.mxu1 %v352_v2  ;;  %v672_v28 = vld [vmem:[%s2185_s6 + $0x380] sm:$0xff]  ;;  %v677_v34 = vld [vmem:[%s2185_s6 + $0x3a8] sm:$0xff] }
  0xfd   : > { %460 = vmatpush.msra.mxu2 %v353_v3  ;;  %478 = vmatpush.msra.mxu3 %v362_v17  ;;  %v604_v30 = vld [vmem:[%s2185_s6 + $0x160] sm:$0xff]  ;;  %v673_v35 = vld [vmem:[%s2185_s6 + $0x388] sm:$0xff] }
  0xfe   : > { %421 = vmatpush.msra.mxu0 %v347_v5  ;;  %441 = vmatpush.msra.mxu1 %v348_v6  ;;  %v600_v36 = vld [vmem:[%s2185_s6 + $0x140] sm:$0xff]  ;;  %v601_v38 = vld [vmem:[%s2185_s6 + $0x148] sm:$0xff] }
  0xff   : > { %461 = vmatpush.msra.mxu2 %v349_v7  ;;  %479 = vmatpush.msra.mxu3 %v358_v13  ;;  %v668_v37 = vld [vmem:[%s2185_s6 + $0x360] sm:$0xff]  ;;  %v669_v39 = vld [vmem:[%s2185_s6 + $0x368] sm:$0xff]  ;;  %v623_v13 = vld [vmem:[%s2185_s6 + $0x1f8] sm:$0xff] }
 0x100   : > { %422 = vmatpush.msra.mxu0 %v343_v9  ;;  %442 = vmatpush.msra.mxu1 %v344_v10  ;;  %v596_v40 = vld [vmem:[%s2185_s6 + $0x120] sm:$0xff]  ;;  %v597_v42 = vld [vmem:[%s2185_s6 + $0x128] sm:$0xff] }
 0x101   : > { %462 = vmatpush.msra.mxu2 %v345_v11  ;;  %423 = vmatmul.f32.vlgmr.msra.gmra.mxu0 %v334_v12  ;;  %v664_v41 = vld [vmem:[%s2185_s6 + $0x340] sm:$0xff]  ;;  %v665_v43 = vld [vmem:[%s2185_s6 + $0x348] sm:$0xff] }
 0x102   : > { %443 = vmatmul.f32.vlgmr.msra.gmra.mxu1 %v334_v12  ;;  %463 = vmatmul.f32.vlgmr.msra.gmra.mxu2 %v334_v12  ;;  %v592_v44 = vld [vmem:[%s2185_s6 + $0x100] sm:$0xff]  ;;  %v593_v46 = vld [vmem:[%s2185_s6 + $0x108] sm:$0xff] }
 0x103   : > { %698 = vmatpush.msrb.mxu0 %v620_v18  ;;  %738 = vmatpush.msrb.mxu2 %v621_v19  ;;  %v660_v45 = vld [vmem:[%s2185_s6 + $0x320] sm:$0xff]  ;;  %v661_v47 = vld [vmem:[%s2185_s6 + $0x328] sm:$0xff] }
 0x104   : > { %718 = vmatpush.msrb.mxu1 %v684_v20  ;;  %480 = vmatpush.msra.mxu3 %v354_v21  ;;  %v588_v48 = vld [vmem:[%s2185_s6 + $0xe0] sm:$0xff]  ;;  %v589_v50 = vld [vmem:[%s2185_s6 + $0xe8] sm:$0xff]  ;;  %v622_v20 = vld [vmem:[%s2185_s6 + $0x1f0] sm:$0xff] }
 0x105   : > { %699 = vmatpush.msrb.mxu0 %v616_v14  ;;  %739 = vmatpush.msrb.mxu2 %v617_v15  ;;  %v656_v49 = vld [vmem:[%s2185_s6 + $0x300] sm:$0xff]  ;;  %v657_v51 = vld [vmem:[%s2185_s6 + $0x308] sm:$0xff]  ;;  %v686_v21 = vld [vmem:[%s2185_s6 + $0x3f0] sm:$0xff] }
 0x106   : > { %719 = vmatpush.msrb.mxu1 %v680_v16  ;;  %481 = vmatpush.msra.mxu3 %v350_v25  ;;  %v584_v52 = vld [vmem:[%s2185_s6 + $0xc0] sm:$0xff]  ;;  %v585_v54 = vld [vmem:[%s2185_s6 + $0xc8] sm:$0xff]  ;;  %v618_v16 = vld [vmem:[%s2185_s6 + $0x1d0] sm:$0xff] }
 0x107   : > { %700 = vmatpush.msrb.mxu0 %v612_v22  ;;  %740 = vmatpush.msrb.mxu2 %v613_v23  ;;  %v652_v53 = vld [vmem:[%s2185_s6 + $0x2e0] sm:$0xff]  ;;  %v653_v55 = vld [vmem:[%s2185_s6 + $0x2e8] sm:$0xff]  ;;  %v619_v22 = vld [vmem:[%s2185_s6 + $0x1d8] sm:$0xff] }
 0x108   : > { %720 = vmatpush.msrb.mxu1 %v676_v24  ;;  %482 = vmatpush.msra.mxu3 %v346_v29  ;;  %v580_v56 = vld [vmem:[%s2185_s6 + $0xa0] sm:$0xff]  ;;  %v581_v58 = vld [vmem:[%s2185_s6 + $0xa8] sm:$0xff]  ;;  %v687_v23 = vld [vmem:[%s2185_s6 + $0x3f8] sm:$0xff] }
 0x109   : > { %701 = vmatpush.msrb.mxu0 %v608_v26  ;;  %741 = vmatpush.msrb.mxu2 %v609_v27  ;;  %v648_v57 = vld [vmem:[%s2185_s6 + $0x2c0] sm:$0xff]  ;;  %v649_v59 = vld [vmem:[%s2185_s6 + $0x2c8] sm:$0xff]  ;;  %v614_v24 = vld [vmem:[%s2185_s6 + $0x1b0] sm:$0xff] }
 0x10a   : > { %721 = vmatpush.msrb.mxu1 %v672_v28  ;;  %483 = vmatmul.f32.vlgmr.msra.gmra.mxu3 %v334_v12  ;;  %v576_v60 = vld [vmem:[%s2185_s6 + $0x80] sm:$0xff]  ;;  %v577_v62 = vld [vmem:[%s2185_s6 + $0x88] sm:$0xff]  ;;  %v682_v25 = vld [vmem:[%s2185_s6 + $0x3d0] sm:$0xff] }
 0x10b   : > { %702 = vmatpush.msrb.mxu0 %v604_v30  ;;  %742 = vmatpush.msrb.mxu2 %v605_v31  ;;  %v644_v61 = vld [vmem:[%s2185_s6 + $0x2a0] sm:$0xff]  ;;  %v645_v63 = vld [vmem:[%s2185_s6 + $0x2a8] sm:$0xff]  ;;  %v615_v26 = vld [vmem:[%s2185_s6 + $0x1b8] sm:$0xff] }
 0x10c   : > { %758 = vmatpush.msrb.mxu3 %v685_v32  ;;  %722 = vmatpush.msrb.mxu1 %v668_v37  ;;  %v572_v0 = vld [vmem:[%s2185_s6 + $0x60] sm:$0xff]  ;;  %v573_v2 = vld [vmem:[%s2185_s6 + $0x68] sm:$0xff]  ;;  %v683_v27 = vld [vmem:[%s2185_s6 + $0x3d8] sm:$0xff] }
 0x10d   : > { %703 = vmatpush.msrb.mxu0 %v600_v36  ;;  %743 = vmatpush.msrb.mxu2 %v601_v38  ;;  %v640_v1 = vld [vmem:[%s2185_s6 + $0x280] sm:$0xff]  ;;  %v641_v3 = vld [vmem:[%s2185_s6 + $0x288] sm:$0xff]  ;;  %v610_v28 = vld [vmem:[%s2185_s6 + $0x190] sm:$0xff] }
 0x10e   : > { %759 = vmatpush.msrb.mxu3 %v681_v33  ;;  %723 = vmatpush.msrb.mxu1 %v664_v41  ;;  %v568_v4 = vld [vmem:[%s2185_s6 + $0x40] sm:$0xff]  ;;  %v569_v6 = vld [vmem:[%s2185_s6 + $0x48] sm:$0xff]  ;;  %v678_v29 = vld [vmem:[%s2185_s6 + $0x3b0] sm:$0xff] }
 0x10f   : > { %704 = vmatpush.msrb.mxu0 %v596_v40  ;;  %744 = vmatpush.msrb.mxu2 %v597_v42  ;;  %v636_v5 = vld [vmem:[%s2185_s6 + $0x260] sm:$0xff]  ;;  %v637_v7 = vld [vmem:[%s2185_s6 + $0x268] sm:$0xff]  ;;  %v611_v30 = vld [vmem:[%s2185_s6 + $0x198] sm:$0xff] }
 0x110   : > { %760 = vmatpush.msrb.mxu3 %v677_v34  ;;  %724 = vmatpush.msrb.mxu1 %v660_v45  ;;  %v564_v8 = vld [vmem:[%s2185_s6 + $0x20] sm:$0xff]  ;;  %v565_v10 = vld [vmem:[%s2185_s6 + $0x28] sm:$0xff]  ;;  %v679_v32 = vld [vmem:[%s2185_s6 + $0x3b8] sm:$0xff] }
 0x111   : > { %705 = vmatpush.msrb.mxu0 %v592_v44  ;;  %745 = vmatpush.msrb.mxu2 %v593_v46  ;;  %v632_v9 = vld [vmem:[%s2185_s6 + $0x240] sm:$0xff]  ;;  %v633_v11 = vld [vmem:[%s2185_s6 + $0x248] sm:$0xff]  ;;  %v606_v33 = vld [vmem:[%s2185_s6 + $0x170] sm:$0xff] }
 0x112   : > { %761 = vmatpush.msrb.mxu3 %v673_v35  ;;  %725 = vmatpush.msrb.mxu1 %v656_v49  ;;  %v560_v12 = vld [vmem:[%s2185_s6] sm:$0xff]  ;;  %v561_v18 = vld [vmem:[%s2185_s6 + $0x8] sm:$0xff]  ;;  %v674_v34 = vld [vmem:[%s2185_s6 + $0x390] sm:$0xff] }
 0x113   : > { %706 = vmatpush.msrb.mxu0 %v588_v48  ;;  %746 = vmatpush.msrb.mxu2 %v589_v50  ;;  %v628_v17 = vld [vmem:[%s2185_s6 + $0x220] sm:$0xff]  ;;  %v629_v19 = vld [vmem:[%s2185_s6 + $0x228] sm:$0xff]  ;;  %v607_v35 = vld [vmem:[%s2185_s6 + $0x178] sm:$0xff] }
 0x114   : > { %762 = vmatpush.msrb.mxu3 %v669_v39  ;;  %726 = vmatpush.msrb.mxu1 %v652_v53  ;;  %v624_v14 = vld [vmem:[%s2185_s6 + $0x200] sm:$0xff]  ;;  %v625_v15 = vld [vmem:[%s2185_s6 + $0x208] sm:$0xff]  ;;  %v675_v37 = vld [vmem:[%s2185_s6 + $0x398] sm:$0xff] }
 0x115   : > { %707 = vmatpush.msrb.mxu0 %v584_v52  ;;  %747 = vmatpush.msrb.mxu2 %v585_v54  ;;  %v339_v31 = vld [vmem:[%s1907_s14] sm:$0xff]  ;;  %v340_v36 = vld [vmem:[%s1907_s14 + $0x8] sm:$0xff]  ;;  %v602_v39 = vld [vmem:[%s2185_s6 + $0x150] sm:$0xff] }
 0x116   : > { %763 = vmatpush.msrb.mxu3 %v665_v43  ;;  %727 = vmatpush.msrb.mxu1 %v648_v57  ;;  %v670_v40 = vld [vmem:[%s2185_s6 + $0x370] sm:$0xff]  ;;  %v603_v41 = vld [vmem:[%s2185_s6 + $0x158] sm:$0xff] }
 0x117   : > { %708 = vmatpush.msrb.mxu0 %v580_v56  ;;  %748 = vmatpush.msrb.mxu2 %v581_v58  ;;  %v671_v44 = vld [vmem:[%s2185_s6 + $0x378] sm:$0xff]  ;;  %v598_v46 = vld [vmem:[%s2185_s6 + $0x130] sm:$0xff] }
 0x118   : > { %764 = vmatpush.msrb.mxu3 %v661_v47  ;;  %728 = vmatpush.msrb.mxu1 %v644_v61  ;;  %v666_v47 = vld [vmem:[%s2185_s6 + $0x350] sm:$0xff]  ;;  %v599_v48 = vld [vmem:[%s2185_s6 + $0x138] sm:$0xff] }
 0x119   : > { %709 = vmatpush.msrb.mxu0 %v576_v60  ;;  %749 = vmatpush.msrb.mxu2 %v577_v62  ;;  %v341_v50 = vld [vmem:[%s1907_s14 + $0x10] sm:$0xff]  ;;  %v663_v56 = vld [vmem:[%s2185_s6 + $0x338] sm:$0xff] }
 0x11a   : > { %765 = vmatpush.msrb.mxu3 %v657_v51  ;;  %729 = vmatpush.msrb.mxu1 %v640_v1  ;;  %v667_v51 = vld [vmem:[%s2185_s6 + $0x358] sm:$0xff]  ;;  %v594_v53 = vld [vmem:[%s2185_s6 + $0x110] sm:$0xff] }
 0x11b   : > { %710 = vmatpush.msrb.mxu0 %v572_v0  ;;  %750 = vmatpush.msrb.mxu2 %v573_v2  ;;  %v662_v54 = vld [vmem:[%s2185_s6 + $0x330] sm:$0xff]  ;;  %v659_v60 = vld [vmem:[%s2185_s6 + $0x318] sm:$0xff] }
 0x11c   : > { %766 = vmatpush.msrb.mxu3 %v653_v55  ;;  %730 = vmatpush.msrb.mxu1 %v636_v5  ;;  %v595_v55 = vld [vmem:[%s2185_s6 + $0x118] sm:$0xff]  ;;  %v590_v57 = vld [vmem:[%s2185_s6 + $0xf0] sm:$0xff] }
 0x11d   : > { %711 = vmatpush.msrb.mxu0 %v568_v4  ;;  %751 = vmatpush.msrb.mxu2 %v569_v6  ;;  %v658_v58 = vld [vmem:[%s2185_s6 + $0x310] sm:$0xff]  ;;  %v587_v0 = vld [vmem:[%s2185_s6 + $0xd8] sm:$0xff] }
 0x11e   : > { %767 = vmatpush.msrb.mxu3 %v649_v59  ;;  %731 = vmatpush.msrb.mxu1 %v632_v9  ;;  %v591_v59 = vld [vmem:[%s2185_s6 + $0xf8] sm:$0xff]  ;;  %v586_v61 = vld [vmem:[%s2185_s6 + $0xd0] sm:$0xff] }
 0x11f   : > { %712 = vmatpush.msrb.mxu0 %v564_v8  ;;  %752 = vmatpush.msrb.mxu2 %v565_v10  ;;  %v655_v1 = vld [vmem:[%s2185_s6 + $0x2f8] sm:$0xff]  ;;  %v650_v4 = vld [vmem:[%s2185_s6 + $0x2d0] sm:$0xff] }
 0x120   : > { %768 = vmatpush.msrb.mxu3 %v645_v63  ;;  %732 = vmatpush.msrb.mxu1 %v628_v17  ;;  %v654_v63 = vld [vmem:[%s2185_s6 + $0x2f0] sm:$0xff]  ;;  %v583_v5 = vld [vmem:[%s2185_s6 + $0xb8] sm:$0xff] }
 0x121   : > { %713 = vmatpush.msrb.mxu0 %v560_v12  ;;  %753 = vmatpush.msrb.mxu2 %v561_v18  ;;  %v651_v6 = vld [vmem:[%s2185_s6 + $0x2d8] sm:$0xff]  ;;  %v578_v8 = vld [vmem:[%s2185_s6 + $0x90] sm:$0xff] }
 0x122   : > { %769 = vmatpush.msrb.mxu3 %v641_v3  ;;  %733 = vmatpush.msrb.mxu1 %v624_v14  ;;  %v582_v3 = vld [vmem:[%s2185_s6 + $0xb0] sm:$0xff]  ;;  %v647_v12 = vld [vmem:[%s2185_s6 + $0x2b8] sm:$0xff] }
 0x123   : > { %778 = vmatpush.msra.mxu0 %v622_v20  ;;  %818 = vmatpush.msra.mxu2 %v623_v13  ;;  %v646_v9 = vld [vmem:[%s2185_s6 + $0x2b0] sm:$0xff]  ;;  %v575_v14 = vld [vmem:[%s2185_s6 + $0x78] sm:$0xff] }
 0x124   : > { %770 = vmatpush.msrb.mxu3 %v637_v7  ;;  %798 = vmatpush.msra.mxu1 %v686_v21  ;;  %v574_v20 = vld [vmem:[%s2185_s6 + $0x70] sm:$0xff]  ;;  %v342_v21 = vld [vmem:[%s1907_s14 + $0x18] sm:$0xff]  ;;  %s1043_s14 = sshll.u32 %s1140_s0, 3  ;;  %s333_s0 = sadd.s32 1, %s1140_s0  }
 0x125   : > { %779 = vmatpush.msra.mxu0 %v618_v16  ;;  %819 = vmatpush.msra.mxu2 %v619_v22  ;;  %v642_v13 = vld [vmem:[%s2185_s6 + $0x290] sm:$0xff]  ;;  %v557_v16 = vld [vmem:[#allocation4 + $0x8] sm:$0xff]  ;;  %s924_s30 = scalar_lea.vmem [#allocation3], %s1043_s14  ;;  %p330_p0 = scmp.ge.s32.totalorder %s333_s0, 8  }
 0x126   : > { %771 = vmatpush.msrb.mxu3 %v633_v11  ;;  %799 = vmatpush.msra.mxu1 %v682_v25  ;;  %v579_v11 = vld [vmem:[%s2185_s6 + $0x98] sm:$0xff]  ;;  %v570_v22 = vld [vmem:[%s2185_s6 + $0x50] sm:$0xff] }
 0x127   : > { %780 = vmatpush.msra.mxu0 %v614_v24  ;;  %820 = vmatpush.msra.mxu2 %v615_v26  ;;  %v571_v24 = vld [vmem:[%s2185_s6 + $0x58] sm:$0xff] }
 0x128   : > { %772 = vmatpush.msrb.mxu3 %v629_v19  ;;  %800 = vmatpush.msra.mxu1 %v678_v29  ;;  %v639_v25 = vld [vmem:[%s2185_s6 + $0x278] sm:$0xff] }
 0x129   : > { %781 = vmatpush.msra.mxu0 %v610_v28  ;;  %821 = vmatpush.msra.mxu2 %v611_v30  ;;  %v634_v28 = vld [vmem:[%s2185_s6 + $0x250] sm:$0xff] }
 0x12a   : > { %773 = vmatpush.msrb.mxu3 %v625_v15  ;;  %801 = vmatpush.msra.mxu1 %v674_v34  ;;  %v643_v15 = vld [vmem:[%s2185_s6 + $0x298] sm:$0xff]  ;;  %v562_v34 = vld [vmem:[%s2185_s6 + $0x10] sm:$0xff] }
 0x12b   : > { %782 = vmatpush.msra.mxu0 %v606_v33  ;;  %822 = vmatpush.msra.mxu2 %v607_v35  ;;  %v630_v35 = vld [vmem:[%s2185_s6 + $0x230] sm:$0xff] }
 0x12c   : > { %838 = vmatpush.msra.mxu3 %v687_v23  ;;  %802 = vmatpush.msra.mxu1 %v670_v40  ;;  %v638_v23 = vld [vmem:[%s2185_s6 + $0x270] sm:$0xff] }
 0x12d   : > { %783 = vmatpush.msra.mxu0 %v602_v39  ;;  %823 = vmatpush.msra.mxu2 %v603_v41  ;;  %v626_v41 = vld [vmem:[%s2185_s6 + $0x210] sm:$0xff] }
 0x12e   : > { %839 = vmatpush.msra.mxu3 %v683_v27  ;;  %803 = vmatpush.msra.mxu1 %v666_v47  ;;  %v566_v27 = vld [vmem:[%s2185_s6 + $0x30] sm:$0xff] }
 0x12f   : > { %784 = vmatpush.msra.mxu0 %v598_v46  ;;  %824 = vmatpush.msra.mxu2 %v599_v48 }
 0x130   : > { %840 = vmatpush.msra.mxu3 %v679_v32  ;;  %804 = vmatpush.msra.mxu1 %v662_v54  ;;  %v635_v32 = vld [vmem:[%s2185_s6 + $0x258] sm:$0xff] }
 0x131   : > { %785 = vmatpush.msra.mxu0 %v594_v53  ;;  %825 = vmatpush.msra.mxu2 %v595_v55 }
 0x132   : > { %841 = vmatpush.msra.mxu3 %v675_v37  ;;  %805 = vmatpush.msra.mxu1 %v658_v58  ;;  %v563_v37 = vld [vmem:[%s2185_s6 + $0x18] sm:$0xff] }
 0x133   : > { %786 = vmatpush.msra.mxu0 %v590_v57  ;;  %826 = vmatpush.msra.mxu2 %v591_v59  ;;  %v335_v59 = vld [vmem:[#allocation5 + $0x8] sm:$0xff] }
 0x134   : > { %842 = vmatpush.msra.mxu3 %v671_v44  ;;  %806 = vmatpush.msra.mxu1 %v654_v63 }
 0x135   : > { %787 = vmatpush.msra.mxu0 %v586_v61  ;;  %827 = vmatpush.msra.mxu2 %v587_v0 }
 0x136   : > { %843 = vmatpush.msra.mxu3 %v667_v51  ;;  %807 = vmatpush.msra.mxu1 %v650_v4 }
 0x137   : > { %788 = vmatpush.msra.mxu0 %v582_v3  ;;  %828 = vmatpush.msra.mxu2 %v583_v5 }
 0x138   : > { %844 = vmatpush.msra.mxu3 %v663_v56  ;;  %808 = vmatpush.msra.mxu1 %v646_v9 }
 0x139   : > { %789 = vmatpush.msra.mxu0 %v578_v8  ;;  %829 = vmatpush.msra.mxu2 %v579_v11 }
 0x13a   : > { %845 = vmatpush.msra.mxu3 %v659_v60  ;;  %809 = vmatpush.msra.mxu1 %v642_v13 }
 0x13b   : > { %790 = vmatpush.msra.mxu0 %v574_v20  ;;  %830 = vmatpush.msra.mxu2 %v575_v14 }
 0x13c   : > { %846 = vmatpush.msra.mxu3 %v655_v1  ;;  %734 = vmatmul.f32.vlgmr.msrb.gmra.mxu1 %v557_v16 }
 0x13d   : > { %774 = vmatmul.f32.vlgmr.msrb.gmra.mxu3 %v557_v16  ;;  %791 = vmatpush.msra.mxu0 %v570_v22 }
 0x13e   : > { %847 = vmatpush.msra.mxu3 %v651_v6  ;;  %810 = vmatpush.msra.mxu1 %v638_v23 }
 0x13f   : > { %831 = vmatpush.msra.mxu2 %v571_v24  ;;  %792 = vmatpush.msra.mxu0 %v566_v27 }
 0x140   : > { %848 = vmatpush.msra.mxu3 %v647_v12  ;;  %811 = vmatpush.msra.mxu1 %v634_v28 }
 0x141   : > { %793 = vmatpush.msra.mxu0 %v562_v34 }
 0x142   : > { %849 = vmatpush.msra.mxu3 %v643_v15  ;;  %812 = vmatpush.msra.mxu1 %v630_v35 }
 0x144   : > { %850 = vmatpush.msra.mxu3 %v639_v25  ;;  %813 = vmatpush.msra.mxu1 %v626_v41 }
 0x145   : > { %814 = vmatmul.f32.vlgmr.msra.gmra.mxu1 %v557_v16 }
 0x146   : > { %851 = vmatpush.msra.mxu3 %v635_v32 }
 0x17e   : > { %v424_v38 = vpop.f32.mrf.mxu0 }
 0x17f   : > { %v487_v42 = vadd.f32 %v424_v38, %v339_v31  ;;  %v444_v43 = vpop.f32.mrf.mxu1  ;;  %v567_v31 = vld [vmem:[%s2185_s6 + $0x38] sm:$0xff] }
 0x180   : > { %v488_v45 = vadd.f32 %v444_v43, %v340_v36  ;;  %v631_v38 = vld [vmem:[%s2185_s6 + $0x238] sm:$0xff]  ;;  %832 = vmatpush.msra.mxu2 %v567_v31 }
 0x181   : > { %v1037_v49 = vmul.f32 -1.442695, %v487_v42  ;;  %v627_v43 = vld [vmem:[%s2185_s6 + $0x218] sm:$0xff]  ;;  %852 = vmatpush.msra.mxu3 %v631_v38 }
 0x182   : > { %v1038_v52 = vmul.f32 -1.442695, %v488_v45  ;;  %833 = vmatpush.msra.mxu2 %v563_v37 }
 0x183   : > { %1101 = vpow2.f32 %v1037_v49  ;;  %853 = vmatpush.msra.mxu3 %v627_v43 }
 0x184   : > { %1103 = vpow2.f32 %v1038_v52  ;;  %854 = vmatmul.f32.vlgmr.msra.gmra.mxu3 %v557_v16 }
 0x185   : > { %v464_v62 = vpop.f32.mrf.mxu2 }
 0x186   : > { %v489_v2 = vadd.f32 %v464_v62, %v341_v50 }
 0x188   : > { %v1039_v7 = vmul.f32 -1.442695, %v489_v2 }
 0x189   : > { %v1102_v10 = vpop.eup %1101 }
 0x18a   : > { %v1104_v17 = vpop.eup %1103  ;;  %v2011_v18 = vadd.f32 1.0, %v1102_v10  ;;  %1105 = vpow2.f32 %v1039_v7 }
 0x18b   : > { %v2013_v19 = vadd.f32 1.0, %v1104_v17  ;;  %v688_v17 = vld [vmem:[%s2186_s7] sm:$0xf] }
 0x18c   : > { %1107 = vrcp.f32 %v2011_v18  ;;  %v514_v46 = vand.u32 2147483648, %v2011_v18  ;;  %v512_v49 = vand.u32 2147483647, %v2011_v18  ;;  %vm508_vm2 = vweird.f32 %v2011_v18 }
 0x18d   : > { %1109 = vrcp.f32 %v2013_v19  ;;  %v484_v26 = vpop.f32.mrf.mxu3  ;;  %v529_v47 = vand.u32 2147483648, %v2013_v19  ;;  %v527_v51 = vand.u32 2147483647, %v2013_v19  ;;  %vm523_vm3 = vweird.f32 %v2013_v19 }
 0x18e   : > { %v490_v30 = vadd.f32 %v484_v26, %v342_v21  ;;  %v515_v56 = vor.u32 1.1754944e-38, %v514_v46  ;;  %vm513_vm6 = vcmp.eq.f32.partialorder %v512_v49, 8.507059e+37  ;;  %v691_v15 = vperm.slane %v688_v17, 1 }
 0x18f   : > { %v530_v58 = vor.u32 1.1754944e-38, %v529_v47  ;;  %vm528_vm7 = vcmp.eq.f32.partialorder %v527_v51, 8.507059e+37  ;;  %v692_v21 = vperm.slane %v688_v17, 2 }
 0x190   : > { %v1106_v29 = vpop.eup %1105 }
 0x191   : > { %v2054_v33 = vadd.f32 1.0, %v1106_v29 }
 0x192   : > { %v1108_v36 = vpop.eup %1107 }
 0x193   : > { %v1110_v39 = vpop.eup %1109  ;;  %v504_v40 = vmul.f32 %v1108_v36, %v2011_v18  ;;  %1111 = vrcp.f32 %v2054_v33  ;;  %vm509_vm0 = vweird.f32 %v1108_v36  ;;  %v544_v6 = vand.u32 2147483648, %v2054_v33 }
 0x194   : > { %v519_v42 = vmul.f32 %v1110_v39, %v2013_v19  ;;  %1113 = vtanh.f32 %v490_v30  ;;  %vm524_vm1 = vweird.f32 %v1110_v39  ;;  %vm510_vm4 = vmor %vm508_vm2, %vm509_vm0  ;;  %vm538_vm9 = vweird.f32 %v2054_v33 }
 0x195   : > { %v505_v44 = vsub.f32 1.0, %v504_v40  ;;  %vm525_vm5 = vmor %vm523_vm3, %vm524_vm1  ;;  %v542_v7 = vand.u32 2147483647, %v2054_v33  ;;  %v545_v9 = vor.u32 1.1754944e-38, %v544_v6  ;;  %v690_v18 = vperm.slane %v688_v17, 0 }
 0x196   : > { %v520_v45 = vsub.f32 1.0, %v519_v42 }
 0x197   : > { %v506_v48 = vmul.f32 %v1108_v36, %v505_v44  ;;  %vm543_vm11 = vcmp.eq.f32.partialorder %v542_v7, 8.507059e+37 }
 0x198   : > { %v521_v50 = vmul.f32 %v1110_v39, %v520_v45 }
 0x199   : > { %v1112_v52 = vpop.eup %1111  ;;  %v507_v53 = vadd.f32 %v1108_v36, %v506_v48 }
 0x19a   : > { %v1114_v54 = vpop.eup %1113  ;;  %v534_v55 = vmul.f32 %v1112_v52, %v2054_v33  ;;  %v522_v57 = vadd.f32 %v1110_v39, %v521_v50  ;;  %vm539_vm8 = vweird.f32 %v1112_v52 }
 0x19b   : > { %v511_v60 = vsel %vm510_vm4, %v1108_v36, %v507_v53  ;;  %vm540_vm10 = vmor %vm538_vm9, %vm539_vm8  ;;  %v693_v36 = vperm.slane %v688_v17, 3 }
 0x19c   : > { %v535_v61 = vsub.f32 1.0, %v534_v55  ;;  %v516_v62 = vsel %vm513_vm6, %v515_v56, %v511_v60  ;;  %v526_v63 = vsel %vm525_vm5, %v1110_v39, %v522_v57 }
 0x19d   : > { %v531_v0 = vsel %vm528_vm7, %v530_v58, %v526_v63  ;;  %v550_v1 = vmul.f32 %v1114_v54, %v516_v62  ;;  %v559_v63 = vld [vmem:[#allocation5] sm:$0xff] }
 0x19e   : > { %v536_v2 = vmul.f32 %v1112_v52, %v535_v61  ;;  %v549_v3 = vmul.f32 %v531_v0, %v335_v59 }
 0x1a0   : > { %v551_v4 = vadd.f32 %v550_v1, %v549_v3  ;;  %v537_v5 = vadd.f32 %v1112_v52, %v536_v2 }
 0x1a2   : > { %1115 = vtanh.f32 %v551_v4  ;;  %555 = vst [vmem:[#allocation5 + $0x8] sm:$0xff] %v551_v4  ;;  %v541_v8 = vsel %vm540_vm10, %v1112_v52, %v537_v5 }
 0x1a3   : > { %v546_v11 = vsel %vm543_vm11, %v545_v9, %v541_v8 }
 0x1a8   : > { %v1116_v10 = vpop.eup %1115 }
 0x1a9   : > { %v553_v12 = vmul.f32 %v1116_v10, %v546_v11 }
 0x1ab   : > { %554 = vst [vmem:[#allocation4] sm:$0xff] %v553_v12  ;;  %714 = vmatmul.f32.vlgmr.msrb.gmra.mxu0 %v553_v12  ;;  %754 = vmatmul.f32.vlgmr.msrb.gmra.mxu2 %v553_v12 }
 0x1b3   : > { %794 = vmatmul.f32.vlgmr.msra.gmra.mxu0 %v553_v12  ;;  %834 = vmatmul.f32.vlgmr.msra.gmra.mxu2 %v553_v12 }
 0x1b9   : > { %v735_v19 = vpop.f32.mrf.mxu1 }
 0x1c0   : > { %v775_v23 = vpop.f32.mrf.mxu3 }
 0x1c2   : > { %v815_v26 = vpop.f32.mrf.mxu1 }
 0x207   : > { %v855_v44 = vpop.f32.mrf.mxu3 }
 0x228   : > { %v715_v20 = vpop.f32.mrf.mxu0 }
 0x229   : > { %v716_v13 = vadd.f32 %v715_v20, %v690_v18  ;;  %v949_v20 = vld [vmem:[%s2187_s8 + $0x78] sm:$0xff] (%p330_p0) }
 0x22a   :  { %1046 = vmatpush.msra.mxu2 (%p330_p0), %v949_v20  ;;  %1047 = vmatpush.msra.mxu3 (%p330_p0), %v949_v20 }
 0x22b   : > { %v736_v14 = vadd.f32 %v735_v19, %v716_v13  ;;  %v948_v13 = vld [vmem:[%s2187_s8 + $0x70] sm:$0xff] (%p330_p0)  ;;  %954 = vmatpush.msra.mxu0 (%p330_p0), %v949_v20  ;;  %1045 = vmatpush.msra.mxu1 (%p330_p0), %v949_v20 }
 0x22c   :  { %1049 = vmatpush.msra.mxu2 (%p330_p0), %v948_v13  ;;  %1050 = vmatpush.msra.mxu3 (%p330_p0), %v948_v13 }
 0x22d   : > { %v1040_v16 = vmul.f32 -1.442695, %v736_v14  ;;  %v947_v14 = vld [vmem:[%s2187_s8 + $0x68] sm:$0xff] (%p330_p0)  ;;  %955 = vmatpush.msra.mxu0 (%p330_p0), %v948_v13  ;;  %1048 = vmatpush.msra.mxu1 (%p330_p0), %v948_v13 }
 0x22e   : > { %v755_v22 = vpop.f32.mrf.mxu2  ;;  %1052 = vmatpush.msra.mxu2 (%p330_p0), %v947_v14  ;;  %1053 = vmatpush.msra.mxu3 (%p330_p0), %v947_v14 }
 0x22f   : > { %1117 = vpow2.f32 %v1040_v16  ;;  %v756_v24 = vadd.f32 %v755_v22, %v691_v15  ;;  %v946_v15 = vld [vmem:[%s2187_s8 + $0x60] sm:$0xff] (%p330_p0)  ;;  %v945_v16 = vld [vmem:[%s2187_s8 + $0x58] sm:$0xff] (%p330_p0)  ;;  %956 = vmatpush.msra.mxu0 (%p330_p0), %v947_v14  ;;  %1051 = vmatpush.msra.mxu1 (%p330_p0), %v947_v14  ;;  %v943_v22 = vld [vmem:[%s2187_s8 + $0x48] sm:$0xff] (%p330_p0) }
 0x230   : > { %v795_v25 = vpop.f32.mrf.mxu0  ;;  %1055 = vmatpush.msra.mxu2 (%p330_p0), %v946_v15  ;;  %1056 = vmatpush.msra.mxu3 (%p330_p0), %v946_v15 }
 0x231   : > { %v776_v27 = vadd.f32 %v775_v23, %v756_v24  ;;  %v796_v28 = vadd.f32 %v795_v25, %v692_v21  ;;  %v944_v21 = vld [vmem:[%s2187_s8 + $0x50] sm:$0xff] (%p330_p0)  ;;  %957 = vmatpush.msra.mxu0 (%p330_p0), %v946_v15  ;;  %1054 = vmatpush.msra.mxu1 (%p330_p0), %v946_v15  ;;  %v942_v23 = vld [vmem:[%s2187_s8 + $0x40] sm:$0xff] (%p330_p0)  ;;  %v941_v24 = vld [vmem:[%s2187_s8 + $0x38] sm:$0xff] (%p330_p0) }
 0x232   :  { %1058 = vmatpush.msra.mxu2 (%p330_p0), %v945_v16  ;;  %1059 = vmatpush.msra.mxu3 (%p330_p0), %v945_v16  ;;  %v940_v25 = vld [vmem:[%s2187_s8 + $0x30] sm:$0xff] (%p330_p0) }
 0x233   : > { %v1041_v29 = vmul.f32 -1.442695, %v776_v27  ;;  %v816_v30 = vadd.f32 %v815_v26, %v796_v28  ;;  %958 = vmatpush.msra.mxu0 (%p330_p0), %v945_v16  ;;  %1057 = vmatpush.msra.mxu1 (%p330_p0), %v945_v16  ;;  %v939_v26 = vld [vmem:[%s2187_s8 + $0x28] sm:$0xff] (%p330_p0)  ;;  %v938_v27 = vld [vmem:[%s2187_s8 + $0x20] sm:$0xff] (%p330_p0)  ;;  %v937_v28 = vld [vmem:[%s2187_s8 + $0x18] sm:$0xff] (%p330_p0) }
 0x234   :  { %1061 = vmatpush.msra.mxu2 (%p330_p0), %v944_v21  ;;  %1062 = vmatpush.msra.mxu3 (%p330_p0), %v944_v21 }
 0x235   : > { %v1118_v31 = vpop.eup %1117  ;;  %1119 = vpow2.f32 %v1041_v29  ;;  %v1042_v32 = vmul.f32 -1.442695, %v816_v30  ;;  %959 = vmatpush.msra.mxu0 (%p330_p0), %v944_v21  ;;  %1060 = vmatpush.msra.mxu1 (%p330_p0), %v944_v21  ;;  %v936_v29 = vld [vmem:[%s2187_s8 + $0x10] sm:$0xff] (%p330_p0)  ;;  %v935_v30 = vld [vmem:[%s2187_s8 + $0x8] sm:$0xff] (%p330_p0) }
 0x236   : > { %v867_v33 = vadd.f32 1.0, %v1118_v31  ;;  %v835_v38 = vpop.f32.mrf.mxu2  ;;  %1064 = vmatpush.msra.mxu2 (%p330_p0), %v943_v22  ;;  %1065 = vmatpush.msra.mxu3 (%p330_p0), %v943_v22  ;;  %v934_v31 = vld [vmem:[%s2187_s8] sm:$0xff] (%p330_p0) }
 0x237   : > { %1121 = vpow2.f32 %v1042_v32  ;;  %v836_v42 = vadd.f32 %v835_v38, %v693_v36  ;;  %960 = vmatpush.msra.mxu0 (%p330_p0), %v943_v22  ;;  %1063 = vmatpush.msra.mxu1 (%p330_p0), %v943_v22 }
 0x238   : > { %1123 = vrcp.f32 %v867_v33  ;;  %v881_v51 = vand.u32 2147483648, %v867_v33  ;;  %vm875_vm13 = vweird.f32 %v867_v33  ;;  %v879_v54 = vand.u32 2147483647, %v867_v33  ;;  %1067 = vmatpush.msra.mxu2 (%p330_p0), %v942_v23  ;;  %1068 = vmatpush.msra.mxu3 (%p330_p0), %v942_v23 }
 0x239   : > { %v856_v47 = vadd.f32 %v855_v44, %v836_v42  ;;  %961 = vmatpush.msra.mxu0 (%p330_p0), %v942_v23  ;;  %1066 = vmatpush.msra.mxu1 (%p330_p0), %v942_v23  ;;  %v1010_v42 = vld [vmem:[#allocation5 + $0x8] sm:$0xff] (%p330_p0)  ;;  %v1133_v44 = vld [vmem:[%s2188_s9] ss:$0 sm:$0xff] (%p330_p0) }
 0x23a   : > { %v882_v60 = vor.u32 1.1754944e-38, %v881_v51  ;;  %vm880_vm1 = vcmp.eq.f32.partialorder %v879_v54, 8.507059e+37  ;;  %1070 = vmatpush.msra.mxu2 (%p330_p0), %v941_v24  ;;  %1071 = vmatpush.msra.mxu3 (%p330_p0), %v941_v24  ;;  %1012 = vst [vmem:[%s2191_s12] sm:$0xff] (%p330_p0), %v1010_v42 }
 0x23b   : > { %v1120_v34 = vpop.eup %1119  ;;  %962 = vmatpush.msra.mxu0 (%p330_p0), %v941_v24  ;;  %1069 = vmatpush.msra.mxu1 (%p330_p0), %v941_v24 }
 0x23c   : > { %v868_v35 = vadd.f32 1.0, %v1120_v34  ;;  %1073 = vmatpush.msra.mxu2 (%p330_p0), %v940_v25  ;;  %1074 = vmatpush.msra.mxu3 (%p330_p0), %v940_v25 }
 0x23d   : > { %v1122_v37 = vpop.eup %1121  ;;  %963 = vmatpush.msra.mxu0 (%p330_p0), %v940_v25  ;;  %1072 = vmatpush.msra.mxu1 (%p330_p0), %v940_v25 }
 0x23e   : > { %v1124_v39 = vpop.eup %1123  ;;  %1125 = vrcp.f32 %v868_v35  ;;  %v869_v40 = vadd.f32 1.0, %v1122_v37  ;;  %v896_v55 = vand.u32 2147483648, %v868_v35  ;;  %v894_v58 = vand.u32 2147483647, %v868_v35  ;;  %1076 = vmatpush.msra.mxu2 (%p330_p0), %v939_v26  ;;  %1077 = vmatpush.msra.mxu3 (%p330_p0), %v939_v26 }
 0x23f   : > { %v871_v41 = vmul.f32 %v1124_v39, %v867_v33  ;;  %vm876_vm12 = vweird.f32 %v1124_v39  ;;  %vm890_vm0 = vweird.f32 %v868_v35  ;;  %964 = vmatpush.msra.mxu0 (%p330_p0), %v939_v26  ;;  %1075 = vmatpush.msra.mxu1 (%p330_p0), %v939_v26 }
 0x240   : > { %1127 = vrcp.f32 %v869_v40  ;;  %vm877_vm14 = vmor %vm875_vm13, %vm876_vm12  ;;  %v897_v62 = vor.u32 1.1754944e-38, %v896_v55  ;;  %vm895_vm3 = vcmp.eq.f32.partialorder %v894_v58, 8.507059e+37  ;;  %v911_v9 = vand.u32 2147483648, %v869_v40  ;;  %1079 = vmatpush.msra.mxu2 (%p330_p0), %v938_v27  ;;  %1080 = vmatpush.msra.mxu3 (%p330_p0), %v938_v27 }
 0x241   : > { %v872_v43 = vsub.f32 1.0, %v871_v41  ;;  %1129 = vtanh.f32 %v856_v47  ;;  %vm905_vm5 = vweird.f32 %v869_v40  ;;  %v909_v10 = vand.u32 2147483647, %v869_v40  ;;  %965 = vmatpush.msra.mxu0 (%p330_p0), %v938_v27  ;;  %1078 = vmatpush.msra.mxu1 (%p330_p0), %v938_v27 }
 0x242   : > { %v912_v12 = vor.u32 1.1754944e-38, %v911_v9  ;;  %1082 = vmatpush.msra.mxu2 (%p330_p0), %v937_v28  ;;  %1083 = vmatpush.msra.mxu3 (%p330_p0), %v937_v28 }
 0x243   : > { %v873_v45 = vmul.f32 %v1124_v39, %v872_v43  ;;  %vm910_vm7 = vcmp.eq.f32.partialorder %v909_v10, 8.507059e+37  ;;  %966 = vmatpush.msra.mxu0 (%p330_p0), %v937_v28  ;;  %1081 = vmatpush.msra.mxu1 (%p330_p0), %v937_v28 }
 0x244   : > { %v1126_v46 = vpop.eup %1125  ;;  %1085 = vmatpush.msra.mxu2 (%p330_p0), %v936_v29  ;;  %1086 = vmatpush.msra.mxu3 (%p330_p0), %v936_v29 }
 0x245   : > { %v886_v48 = vmul.f32 %v1126_v46, %v868_v35  ;;  %v874_v49 = vadd.f32 %v1124_v39, %v873_v45  ;;  %vm891_vm15 = vweird.f32 %v1126_v46  ;;  %967 = vmatpush.msra.mxu0 (%p330_p0), %v936_v29  ;;  %1084 = vmatpush.msra.mxu1 (%p330_p0), %v936_v29 }
 0x246   : > { %v1128_v50 = vpop.eup %1127  ;;  %vm892_vm2 = vmor %vm890_vm0, %vm891_vm15  ;;  %1088 = vmatpush.msra.mxu2 (%p330_p0), %v935_v30  ;;  %1089 = vmatpush.msra.mxu3 (%p330_p0), %v935_v30 }
 0x247   : > { %v887_v52 = vsub.f32 1.0, %v886_v48  ;;  %v901_v53 = vmul.f32 %v1128_v50, %v869_v40  ;;  %v878_v57 = vsel %vm877_vm14, %v1124_v39, %v874_v49  ;;  %v1130_v2 = vpop.eup %1129  ;;  %vm906_vm4 = vweird.f32 %v1128_v50  ;;  %968 = vmatpush.msra.mxu0 (%p330_p0), %v935_v30  ;;  %1087 = vmatpush.msra.mxu1 (%p330_p0), %v935_v30  ;;  %v1006_v40 = vld [vmem:[#allocation4] sm:$0xff] (%p330_p0) }
 0x248   : > { %v883_v0 = vsel %vm880_vm1, %v882_v60, %v878_v57  ;;  %vm907_vm6 = vmor %vm905_vm5, %vm906_vm4  ;;  %1091 = vmatpush.msra.mxu2 (%p330_p0), %v934_v31  ;;  %1092 = vmatpush.msra.mxu3 (%p330_p0), %v934_v31  ;;  %1008 = vst [vmem:[%s2190_s11] sm:$0xff] (%p330_p0), %v1006_v40 }
 0x249   : > { %v888_v56 = vmul.f32 %v1126_v46, %v887_v52  ;;  %v902_v59 = vsub.f32 1.0, %v901_v53  ;;  %v917_v6 = vmul.f32 %v1130_v2, %v883_v0  ;;  %969 = vmatpush.msra.mxu0 (%p330_p0), %v934_v31  ;;  %1090 = vmatpush.msra.mxu1 (%p330_p0), %v934_v31 }
 0x24b   : > { %v889_v61 = vadd.f32 %v1126_v46, %v888_v56  ;;  %v903_v3 = vmul.f32 %v1128_v50, %v902_v59 }
 0x24d   : > { %v893_v1 = vsel %vm892_vm2, %v1126_v46, %v889_v61  ;;  %v904_v8 = vadd.f32 %v1128_v50, %v903_v3 }
 0x24e   : > { %v898_v4 = vsel %vm895_vm3, %v897_v62, %v893_v1 }
 0x24f   : > { %v916_v5 = vmul.f32 %v898_v4, %v559_v63  ;;  %v908_v11 = vsel %vm907_vm6, %v1128_v50, %v904_v8 }
 0x250   : > { %v913_v18 = vsel %vm910_vm7, %v912_v12, %v908_v11 }
 0x251   : > { %v918_v7 = vadd.f32 %v917_v6, %v916_v5 }
 0x253   : > { %1131 = vtanh.f32 %v918_v7  ;;  %922 = vst [vmem:[#allocation5] sm:$0xff] %v918_v7 }
 0x259   : > { %v1132_v17 = vpop.eup %1131  ;;  %332 = sbr.rel (!%p330_p0) target bundleno = 225 (0xe1), region = 95 }
 0x25a   : > { %v920_v19 = vmul.f32 %v1132_v17, %v913_v18  ;;  %v1011_v43 = vld [vmem:[#allocation5] sm:$0xff] (%p330_p0) }
 0x25b   :  { %1013 = vst [vmem:[%s2191_s12 + $0x8] sm:$0xff] (%p330_p0), %v1011_v43 }
 0x25c   : > { %921 = vst [vmem:[#allocation4 + $0x8] sm:$0xff] %v920_v19 }
 0x25d   : > { %925 = vst [vmem:[%s924_s30] sm:$0xff] %v920_v19 }
 0x263   :  { %v1007_v41 = vld [vmem:[#allocation4 + $0x8] sm:$0xff] }
 0x264   :  { %v930_v32 = vld [vmem:[#allocation3 + $0x20] sm:$0xff]  ;;  %v932_v33 = vld [vmem:[#allocation3 + $0x30] sm:$0xff]  ;;  %v931_v36 = vld [vmem:[#allocation3 + $0x28] sm:$0xff]  ;;  %1009 = vst [vmem:[%s2190_s11 + $0x8] sm:$0xff] %v1007_v41 }
 0x265   :  { %v926_v34 = vld [vmem:[#allocation3] sm:$0xff]  ;;  %v928_v35 = vld [vmem:[#allocation3 + $0x10] sm:$0xff]  ;;  %982 = vmatmul.f32.vlgmr.msra.gmra.mxu2 %v930_v32  ;;  %988 = vmatmul.f32.vlgmr.msra.gmra.mxu3 %v932_v33  ;;  %v933_v37 = vld [vmem:[#allocation3 + $0x38] sm:$0xff] }
 0x266   :  { %970 = vmatmul.f32.vlgmr.msra.gmra.mxu0 %v926_v34  ;;  %976 = vmatmul.f32.vlgmr.msra.gmra.mxu1 %v928_v35  ;;  %v927_v38 = vld [vmem:[#allocation3 + $0x8] sm:$0xff]  ;;  %v929_v39 = vld [vmem:[#allocation3 + $0x18] sm:$0xff] }
 0x26d   :  { %985 = vmatmul.f32.gmra.mxu2 %v931_v36  ;;  %991 = vmatmul.f32.gmra.mxu3 %v933_v37 }
 0x26e   :  { %973 = vmatmul.f32.gmra.mxu0 %v927_v38  ;;  %979 = vmatmul.f32.gmra.mxu1 %v929_v39 }
 0x2e3   :  { %v971_v45 = vpop.f32.mrf.mxu0  ;;  %v977_v46 = vpop.f32.mrf.mxu1 }
 0x2e4   :  { %v972_v47 = vadd.f32 %v1133_v44, %v971_v45  ;;  %v978_v48 = vadd.f32 %v1133_v44, %v977_v46 }
 0x2e6   :  { %995 = vst [vmem:[%s2189_s10] sm:$0xff] %v972_v47 }
 0x2e7   :  { %997 = vst [vmem:[%s2189_s10 + $0x10] sm:$0xff] %v978_v48 }
 0x2e8   :  { %v983_v49 = vpop.f32.mrf.mxu2  ;;  %v989_v50 = vpop.f32.mrf.mxu3 }
 0x2e9   :  { %v984_v51 = vadd.f32 %v1133_v44, %v983_v49  ;;  %v990_v52 = vadd.f32 %v1133_v44, %v989_v50 }
 0x2eb   :  { %999 = vst [vmem:[%s2189_s10 + $0x20] sm:$0xff] %v984_v51  ;;  %v974_v53 = vpop.f32.mrf.mxu0  ;;  %v980_v54 = vpop.f32.mrf.mxu1 }
 0x2ec   :  { %1001 = vst [vmem:[%s2189_s10 + $0x30] sm:$0xff] %v990_v52  ;;  %v975_v55 = vadd.f32 %v1133_v44, %v974_v53  ;;  %v981_v56 = vadd.f32 %v1133_v44, %v980_v54 }
 0x2ee   :  { %996 = vst [vmem:[%s2189_s10 + $0x8] sm:$0xff] %v975_v55 }
 0x2ef   :  { %998 = vst [vmem:[%s2189_s10 + $0x18] sm:$0xff] %v981_v56 }
 0x2f0   :  { %v986_v57 = vpop.f32.mrf.mxu2  ;;  %v992_v58 = vpop.f32.mrf.mxu3 }
 0x2f1   :  { %v987_v59 = vadd.f32 %v1133_v44, %v986_v57  ;;  %v993_v60 = vadd.f32 %v1133_v44, %v992_v58 }
 0x2f3   :  { %1000 = vst [vmem:[%s2189_s10 + $0x28] sm:$0xff] %v987_v59 }
 0x2f4   :  { %1002 = vst [vmem:[%s2189_s10 + $0x38] sm:$0xff] %v993_v60 }

</bundles_post_ra>
